<compile_context>
chip_gen: v7x
topology: tpu7x:2x2x1
jax: 0.10.0
libtpu: 0.0.40
codegen_flags: <defaults>
</compile_context>

<pallas_src>
import numpy as np
import jax
import jax.numpy as jnp
from jax import lax
from jax.experimental import pallas as pl
from jax.experimental.pallas import tpu as pltpu

# ------------------------- static model config -------------------------
N_HIDDEN = 1
HIDDEN_DIM = 32
FOURIER = (True, 4, 4, True, 1.0, 2.5)  # (use, L_pos, L_dir, barf, lv/epoch, lv_start)
DELAYED_DIRECTION = True
DELAYED_DENSITY = True
N_SEGMENTS = 2
DISTRIBUTE_VARIANCE = False

LP = FOURIER[1]
LD = FOURIER[2]
# TODO(synk): alpha is a training-time schedule; it is folded statically into
# the weight slabs below and must be re-folded whenever alpha changes.
ALPHA = FOURIER[5]
POS_HALF = 3 * LP            # 12
DIR_HALF = 3 * LD            # 12
ENC = POS_HALF + DIR_HALF    # 24 fused arg rows (pos args 0:12, dir args 12:24)
ENC2 = 2 * ENC               # 48 encoding rows ([cos | sin])
IN_F = 9                     # packed input rows: pos(3) dir(3) t0(1) t1(1) pw(1)
HD = HIDDEN_DIM
HD2 = HIDDEN_DIM // 2


def _round_up(x, m):
    return ((x + m - 1) // m) * m


# ------------------------------ kernel ---------------------------------
def mipnerf_kernel(x_ref, renc_ref, ebias_ref, wenc_ref, whid_ref, wc1_ref,
                   bias_ref, out_ref):
    f32 = jnp.float32
    bf16 = jnp.bfloat16

    x = x_ref[...]                       # (9, TB) f32, batch on the lane axis
    pos = x[0:3, :]
    d = x[3:6, :]
    t0 = x[6:7, :]
    t1 = x[7:8, :]
    pw = x[8:9, :]

    # --- IntegratedFourierFeatures geometry (dense 1..3-row slabs) ---
    t_mu = (t0 + t1) * 0.5
    t_delta = (t1 - t0) * 0.5
    tm2 = t_mu * t_mu
    td2 = t_delta * t_delta
    td4 = td2 * td2
    inv_denom = 1.0 / (3.0 * tm2 + td2)                 # exact (feeds sigma^2)
    mu_diff = 2.0 * t_mu * td2 * inv_denom
    pos_mu = pos + mu_diff * d
    r_dot = pw * (2.0 / (12.0 ** 0.5))
    sigma_t_sq = (td2 * (1.0 / 3.0)
                  - (4.0 / 15.0) * td4 * (12.0 * tm2 - td2) * inv_denom * inv_denom)
    sigma_r_sq = (r_dot * r_dot) * (0.25 * tm2 + (5.0 / 12.0) * td2
                                    - (4.0 / 15.0) * td4 * inv_denom)
    d2 = d * d
    sum_d2 = d2[0:1, :] + d2[1:2, :] + d2[2:3, :]       # (1, TB)
    diag_sigma = sigma_t_sq * d2 + sigma_r_sq * (1.0 - d2 / sum_d2)   # (3, TB)

    # --- fused Fourier encoding: one matmul + one sin + one exp ---
    # geom rows: [pos_mu(3) | dir(3) | diag_sigma(3)]
    # er rows  : 0:24  args (pos @ 2*pi*2^j, dir @ 2^j) + pi/2    -> cos half
    #            24:48 args                                        -> sin half
    #            48:96 dsg (4^j * diag_sigma on pos rows, 0 on dir rows)
    geom = jnp.concatenate([pos_mu, d, diag_sigma], axis=0)           # (9, TB)
    er = (jnp.dot(renc_ref[...], geom, preferred_element_type=f32)
          + ebias_ref[...])                                           # (96, TB)
    enc = jnp.sin(er[0:ENC2, :]) * jnp.exp(-0.5 * er[ENC2:2 * ENC2, :])  # (48, TB)
    # (barf masks are pre-folded into the wenc slab)

    # --- one shared matmul feeds every encoding-consuming layer ---
    # encc rows: 0:32 seg-0 input, 32:64 seg-1 enc part, 64:80 head enc part
    encc = jnp.dot(wenc_ref[...], enc.astype(bf16), preferred_element_type=f32)

    whid = whid_ref[...]                 # (112, 32) bf16: [w01T|w10zT|w11T|wc0zT]
    b = bias_ref[...]                    # (148, 1)  f32

    # segment 0: Linear(enc -> 32) -> ReLU -> Linear(32 -> 32) -> ReLU
    h = jnp.maximum(encc[0:HD, :] + b[0:HD, :], 0.0)
    z = (jnp.dot(whid[0:HD, :], h.astype(bf16), preferred_element_type=f32)
         + b[HD:2 * HD, :])
    z = jnp.maximum(z, 0.0)

    # segment 1: Linear(cat(z, pos_enc) -> 32) -> ReLU -> Linear(32 -> 32)
    h = (jnp.dot(whid[HD:2 * HD, :], z.astype(bf16), preferred_element_type=f32)
         + encc[HD:2 * HD, :] + b[2 * HD:3 * HD, :])
    h = jnp.maximum(h, 0.0)
    z = (jnp.dot(whid[2 * HD:3 * HD, :], h.astype(bf16), preferred_element_type=f32)
         + b[3 * HD:4 * HD, :])          # no ReLU after the last segment

    # color/density head: Linear(cat(z, dir_enc) -> 16) -> ReLU -> Linear(16 -> 4)
    h = (jnp.dot(whid[3 * HD:3 * HD + HD2, :], z.astype(bf16),
                 preferred_element_type=f32)
         + encc[2 * HD:2 * HD + HD2, :] + b[4 * HD:4 * HD + HD2, :])
    h = jnp.maximum(h, 0.0)
    fo = (jnp.dot(wc1_ref[...], h.astype(bf16), preferred_element_type=f32)
          + b[4 * HD + HD2:4 * HD + HD2 + 4, :])                      # (4, TB)

    # rows 0..2 -> sigmoid (rgb), row 3 -> softplus(threshold=8) (density).
    # fo is only 4 rows in this layout, so computing both activations and
    # selecting by row costs a handful of vregs; the store stays one dense
    # (4, TB) lane-aligned write.
    sig = 1.0 / (1.0 + jnp.exp(-fo))
    sp = jnp.where(fo > 8.0, fo, jnp.log1p(jnp.exp(jnp.minimum(fo, 8.0))))
    row = lax.broadcasted_iota(jnp.int32, fo.shape, 0)
    out_ref[...] = jnp.where(row < 3, sig, sp)


# --------------------------- constant prep -----------------------------
def barf_mask_half(levels, alpha):
    """Half (cos OR sin) of the barf mask: repeat_interleave(3), length 3*levels."""
    k = np.arange(levels, dtype=np.float32)
    a = alpha - k
    m = np.where(a < 0.0, 0.0,
                 np.where(a < 1.0, (1.0 - np.cos(a * np.pi)) / 2.0, 1.0))
    return np.repeat(m, 3).astype(np.float32)


def barf_mask_full(levels, alpha):
    return np.tile(barf_mask_half(levels, alpha), 2)


def make_renc_ebias():
    """(96, 9) block matrix + (96, 1) bias for the fused encoding matmul."""
    renc = np.zeros((4 * ENC, IN_F), np.float32)
    ebias = np.zeros((4 * ENC, 1), np.float32)
    for c in range(3):
        for j in range(LP):
            rc = c * LP + j                     # cos(pos) row
            rs = ENC + c * LP + j               # sin(pos) row
            renc[rc, c] = 2.0 * np.pi * (2.0 ** j)
            renc[rs, c] = 2.0 * np.pi * (2.0 ** j)
            renc[ENC2 + rc, 6 + c] = 4.0 ** j   # dsg for cos(pos) row
            renc[ENC2 + rs, 6 + c] = 4.0 ** j   # dsg for sin(pos) row
        for j in range(LD):
            rc = POS_HALF + c * LD + j          # cos(dir) row
            rs = ENC + POS_HALF + c * LD + j    # sin(dir) row
            renc[rc, 3 + c] = 2.0 ** j
            renc[rs, 3 + c] = 2.0 ** j
    ebias[0:ENC, 0] = np.pi / 2.0               # sin(x + pi/2) == cos(x)
    return renc, ebias


def build_params(key):
    def dense(k, fan_in, fan_out):
        k1, k2 = jax.random.split(k)
        bound = 1.0 / np.sqrt(fan_in)
        w = jax.random.uniform(k1, (fan_in, fan_out), jnp.float32, -bound, bound)
        b = jax.random.uniform(k2, (1, fan_out), jnp.float32, -bound, bound)
        return w, b

    ks = jax.random.split(key, 6)
    w00, b00 = dense(ks[0], 2 * POS_HALF, HIDDEN_DIM)
    w01, b01 = dense(ks[1], HIDDEN_DIM, HIDDEN_DIM)
    w10, b10 = dense(ks[2], HIDDEN_DIM + 2 * POS_HALF, HIDDEN_DIM)
    w11, b11 = dense(ks[3], HIDDEN_DIM, HIDDEN_DIM)
    wc0, bc0 = dense(ks[4], HIDDEN_DIM + 2 * DIR_HALF, HIDDEN_DIM // 2)
    wc1, bc1 = dense(ks[5], HIDDEN_DIM // 2, 3 + int(DELAYED_DENSITY))
    return dict(w00=w00, b00=b00, w01=w01, b01=b01,
                w10=w10, b10=b10, w11=w11, b11=b11,
                wc0=wc0, bc0=bc0, wc1=wc1, bc1=bc1)


# --------------------------- glue / wrapper -----------------------------
def _choose_tile(batch, block_b):
    bp = _round_up(max(batch, 1), 128)
    tb = min(_round_up(block_b, 128), bp)
    # v7x has two TensorCores: keep >= 2 grid steps when the batch allows it.
    if bp >= 256 and bp <= tb:
        tb = _round_up(bp // 2, 128)
    bp = _round_up(bp, tb)
    return bp, tb


def mipnerf_forward(pos, dir_, t_start, t_end, pixel_width, params,
                    block_b=2048, matmul_dtype=jnp.bfloat16):
    f32 = jnp.float32
    B = pos.shape[0]
    Bp, TBv = _choose_tile(B, block_b)

    # Pack the 5 small inputs feature-major: (9, Bp), batch on the lane axis.
    packed = jnp.concatenate(
        [pos, dir_, t_start, t_end, pixel_width], axis=1).astype(f32).T   # (9, B)
    if Bp > B:
        # Safe pad column: dir=(1,1,1), t0=t1=pw=1 keeps every denominator finite.
        pad_col = jnp.array([0., 0., 0., 1., 1., 1., 1., 1., 1.], f32)[:, None]
        packed = jnp.concatenate([packed, jnp.tile(pad_col, (1, Bp - B))], axis=1)

    renc_np, ebias_np = make_renc_ebias()
    renc = jnp.asarray(renc_np)
    ebias = jnp.asarray(ebias_np)

    # Fold the static barf masks into the encoding-consuming weights and pack
    # them (transposed) into a single (80, 48) slab; hidden weights into one
    # (112, 32) slab; all biases into one (148, 1) slab.
    mp = jnp.asarray(barf_mask_half(LP, ALPHA))[:, None]   # (12, 1)
    md = jnp.asarray(barf_mask_half(LD, ALPHA))[:, None]   # (12, 1)
    p = params
    w00, w10, wc0 = p['w00'], p['w10'], p['wc0']

    wenc = jnp.zeros((2 * HD + HD2, ENC2), f32)
    wenc = wenc.at[0:HD, 0:POS_HALF].set((mp * w00[0:POS_HALF]).T)
    wenc = wenc.at[0:HD, ENC:ENC + POS_HALF].set((mp * w00[POS_HALF:]).T)
    wenc = wenc.at[HD:2 * HD, 0:POS_HALF].set((mp * w10[HD:HD + POS_HALF]).T)
    wenc = wenc.at[HD:2 * HD, ENC:ENC + POS_HALF].set((mp * w10[HD + POS_HALF:]).T)
    wenc = wenc.at[2 * HD:, POS_HALF:ENC].set((md * wc0[HD:HD + DIR_HALF]).T)
    wenc = wenc.at[2 * HD:, ENC + POS_HALF:].set((md * wc0[HD + DIR_HALF:]).T)
    wenc = wenc.astype(matmul_dtype)

    whid = jnp.concatenate(
        [p['w01'].T, w10[0:HD].T, p['w11'].T, wc0[0:HD].T],
        axis=0).astype(matmul_dtype)                                     # (112, 32)
    wc1t = p['wc1'].T.astype(matmul_dtype)                               # (4, 16)
    bias = jnp.concatenate(
        [p['b00'].T, p['b01'].T, p['b10'].T, p['b11'].T, p['bc0'].T, p['bc1'].T],
        axis=0).astype(f32)                                              # (148, 1)

    consts = [renc, ebias, wenc, whid, wc1t, bias]

    grid = (Bp // TBv,)
    in_specs = ([pl.BlockSpec((IN_F, TBv), lambda i: (0, i))] +
                [pl.BlockSpec(c.shape, lambda i: (0, 0)) for c in consts])
    out_specs = pl.BlockSpec((4, TBv), lambda i: (0, i))
    out_shape = jax.ShapeDtypeStruct((4, Bp), f32)

    out = pl.pallas_call(
        mipnerf_kernel,
        out_shape=out_shape,
        grid_spec=pltpu.PrefetchScalarGridSpec(
            num_scalar_prefetch=0,
            grid=grid,
            in_specs=in_specs,
            out_specs=out_specs),
        compiler_params=pltpu.CompilerParams(
            dimension_semantics=("parallel",),
            vmem_limit_bytes=32 * 1024 * 1024),
    )(packed, *consts)

    density = out[3, :B]
    rgb = out[0:3, :B].T
    return density, rgb


# -------------------------- pure-JAX reference --------------------------
def reference_forward(pos, dir_, t_start, t_end, pixel_width, params):
    t_mu = (t_start + t_end) / 2
    t_delta = (t_end - t_start) / 2
    mu_diff = 2 * t_mu * t_delta ** 2 / (3 * t_mu ** 2 + t_delta ** 2)
    pos_mu = pos + mu_diff * dir_
    r_dot = pixel_width * 2 / np.sqrt(12.0)
    sigma_t_sq = (t_delta ** 2 / 3
                  - 4 * t_delta ** 4 * (12 * t_mu ** 2 - t_delta ** 2)
                  / (15 * (3 * t_mu ** 2 + t_delta ** 2) ** 2))
    sigma_r_sq = r_dot ** 2 * (t_mu ** 2 / 4 + 5 * t_delta ** 2 / 12
                               - 4 * t_delta ** 4 / (15 * (3 * t_mu ** 2 + t_delta ** 2)))
    scale4 = jnp.tile(4.0 ** jnp.arange(LP), 3)
    diag_sigma = (sigma_t_sq * dir_ ** 2
                  + sigma_r_sq * (1 - dir_ ** 2 / jnp.sum(dir_ ** 2, axis=1, keepdims=True)))
    dsg = jnp.repeat(diag_sigma, LP, axis=1) * scale4
    weight = jnp.exp(-dsg / 2)
    scale_pe = 2 * np.pi * jnp.tile(2.0 ** jnp.arange(LP), 3)
    args = jnp.repeat(pos_mu, LP, axis=1) * scale_pe
    pe = jnp.concatenate([jnp.cos(args), jnp.sin(args)], axis=1)
    ipe = pe * jnp.tile(weight, (1, 2))
    pos_enc = ipe * barf_mask_full(LP, ALPHA)[None, :]
    scale_d = jnp.tile(2.0 ** jnp.arange(LD), 3)
    args_d = jnp.repeat(dir_, LD, axis=1) * scale_d
    dir_enc = (jnp.concatenate([jnp.cos(args_d), jnp.sin(args_d)], axis=1)
               * barf_mask_full(LD, ALPHA)[None, :])

    p = params
    relu = lambda x: jnp.maximum(x, 0.0)
    z = relu(relu(pos_enc @ p['w00'] + p['b00']) @ p['w01'] + p['b01'])
    x1 = jnp.concatenate([z, pos_enc], axis=1)
    z = relu(x1 @ p['w10'] + p['b10']) @ p['w11'] + p['b11']
    fin = jnp.concatenate([z, dir_enc], axis=1)
    fo = relu(fin @ p['wc0'] + p['bc0']) @ p['wc1'] + p['bc1']
    dens_raw = fo[:, -1]
    density = jnp.where(dens_raw > 8.0, dens_raw,
                        jnp.log1p(jnp.exp(jnp.minimum(dens_raw, 8.0))))
    rgb = 1.0 / (1.0 + jnp.exp(-fo[:, :3]))
    return density, rgb


# --------------------------------- main ----------------------------------
if __name__ == "__main__":
    key = jax.random.PRNGKey(0)
    kp, k1, k2, k3, k4 = jax.random.split(key, 5)
    params = build_params(kp)

    B = 16
    pos = jax.random.uniform(k1, (B, 3), jnp.float32, -0.5, 0.5)
    dir_raw = jax.random.normal(k2, (B, 3), jnp.float32)
    dir_ = dir_raw / jnp.linalg.norm(dir_raw, axis=1, keepdims=True)
    t_start = jax.random.uniform(k3, (B, 1), jnp.float32, 1.0, 2.0)
    t_end = t_start + jax.random.uniform(k4, (B, 1), jnp.float32, 0.1, 0.5)
    pixel_width = jnp.full((B, 1), 1.0 / 64.0, jnp.float32)

    density, rgb = mipnerf_forward(pos, dir_, t_start, t_end, pixel_width, params)
    density = jax.block_until_ready(density)
    rgb = jax.block_until_ready(rgb)

    d_ref, rgb_ref = reference_forward(pos, dir_, t_start, t_end, pixel_width, params)
    # bf16 MXU operands with f32 accumulation -> allow ~1-2% error.
    np.testing.assert_allclose(np.asarray(density), np.asarray(d_ref), rtol=2e-2, atol=2e-2)
    np.testing.assert_allclose(np.asarray(rgb), np.asarray(rgb_ref), rtol=2e-2, atol=2e-2)
    assert density.shape == (B,) and rgb.shape == (B, 3)
    print("KERNEL_OK")
</pallas_src>

<mosaic_0001>
module attributes {stable_mosaic.version = 11 : i64} {
  func.func @mipnerf_kernel(%arg0: i32, %arg1: memref<9x128xf32, #tpu.memory_space<vmem>>, %arg2: memref<96x9xf32, #tpu.memory_space<vmem>>, %arg3: memref<96x1xf32, #tpu.memory_space<vmem>>, %arg4: memref<80x48xbf16, #tpu.memory_space<vmem>>, %arg5: memref<112x32xbf16, #tpu.memory_space<vmem>>, %arg6: memref<4x16xbf16, #tpu.memory_space<vmem>>, %arg7: memref<148x1xf32, #tpu.memory_space<vmem>>, %arg8: memref<4x128xf32, #tpu.memory_space<vmem>>) attributes {dimension_semantics = [#tpu.dimension_semantics<parallel>], iteration_bounds = array<i64: 1>, scalar_prefetch = 0 : i64, scratch_operands = 0 : i64, tpu.core_type = #tpu.core_type<tc>, window_params = [{transform_indices = @transform_0, window_bounds = array<i64: 9, 128>}, {pipeline_mode = #tpu.pipeline_mode<synchronous>, transform_indices = @transform_1, window_bounds = array<i64: 96, 9>}, {pipeline_mode = #tpu.pipeline_mode<synchronous>, transform_indices = @transform_2, window_bounds = array<i64: 96, 1>}, {pipeline_mode = #tpu.pipeline_mode<synchronous>, transform_indices = @transform_3, window_bounds = array<i64: 80, 48>}, {pipeline_mode = #tpu.pipeline_mode<synchronous>, transform_indices = @transform_4, window_bounds = array<i64: 112, 32>}, {pipeline_mode = #tpu.pipeline_mode<synchronous>, transform_indices = @transform_5, window_bounds = array<i64: 4, 16>}, {pipeline_mode = #tpu.pipeline_mode<synchronous>, transform_indices = @transform_6, window_bounds = array<i64: 148, 1>}, {transform_indices = @transform_7, window_bounds = array<i64: 4, 128>}]} {
    %c0 = arith.constant 0 : index
    %c0_0 = arith.constant 0 : index
    %0 = vector.load %arg1[%c0, %c0_0] : memref<9x128xf32, #tpu.memory_space<vmem>>, vector<9x128xf32>
    %1 = vector.extract_strided_slice %0 {offsets = [0, 0], sizes = [3, 128], strides = [1, 1]} : vector<9x128xf32> to vector<3x128xf32>
    %2 = vector.extract_strided_slice %0 {offsets = [3, 0], sizes = [3, 128], strides = [1, 1]} : vector<9x128xf32> to vector<3x128xf32>
    %3 = vector.extract_strided_slice %0 {offsets = [6, 0], sizes = [1, 128], strides = [1, 1]} : vector<9x128xf32> to vector<1x128xf32>
    %4 = vector.extract_strided_slice %0 {offsets = [7, 0], sizes = [1, 128], strides = [1, 1]} : vector<9x128xf32> to vector<1x128xf32>
    %5 = vector.extract_strided_slice %0 {offsets = [8, 0], sizes = [1, 128], strides = [1, 1]} : vector<9x128xf32> to vector<1x128xf32>
    %6 = arith.addf %3, %4 : vector<1x128xf32>
    %cst = arith.constant 5.000000e-01 : f32
    %7 = vector.broadcast %cst : f32 to vector<1x128xf32>
    %8 = arith.mulf %6, %7 : vector<1x128xf32>
    %9 = arith.subf %4, %3 : vector<1x128xf32>
    %cst_1 = arith.constant 5.000000e-01 : f32
    %10 = vector.broadcast %cst_1 : f32 to vector<1x128xf32>
    %11 = arith.mulf %9, %10 : vector<1x128xf32>
    %12 = arith.mulf %8, %8 : vector<1x128xf32>
    %13 = arith.mulf %11, %11 : vector<1x128xf32>
    %14 = arith.mulf %13, %13 : vector<1x128xf32>
    %cst_2 = arith.constant 3.000000e+00 : f32
    %15 = vector.broadcast %cst_2 : f32 to vector<1x128xf32>
    %16 = arith.mulf %15, %12 : vector<1x128xf32>
    %17 = arith.addf %16, %13 : vector<1x128xf32>
    %cst_3 = arith.constant 1.000000e+00 : f32
    %18 = vector.broadcast %cst_3 : f32 to vector<1x128xf32>
    %19 = arith.divf %18, %17 : vector<1x128xf32>
    %cst_4 = arith.constant 2.000000e+00 : f32
    %20 = vector.broadcast %cst_4 : f32 to vector<1x128xf32>
    %21 = arith.mulf %20, %8 : vector<1x128xf32>
    %22 = arith.mulf %21, %13 : vector<1x128xf32>
    %23 = arith.mulf %22, %19 : vector<1x128xf32>
    %24 = vector.broadcast %23 : vector<1x128xf32> to vector<3x128xf32>
    %25 = arith.mulf %24, %2 : vector<3x128xf32>
    %26 = arith.addf %1, %25 : vector<3x128xf32>
    %cst_5 = arith.constant 0.577350259 : f32
    %27 = vector.broadcast %cst_5 : f32 to vector<1x128xf32>
    %28 = arith.mulf %5, %27 : vector<1x128xf32>
    %cst_6 = arith.constant 0.333333343 : f32
    %29 = vector.broadcast %cst_6 : f32 to vector<1x128xf32>
    %30 = arith.mulf %13, %29 : vector<1x128xf32>
    %cst_7 = arith.constant 0.266666681 : f32
    %31 = vector.broadcast %cst_7 : f32 to vector<1x128xf32>
    %32 = arith.mulf %31, %14 : vector<1x128xf32>
    %cst_8 = arith.constant 1.200000e+01 : f32
    %33 = vector.broadcast %cst_8 : f32 to vector<1x128xf32>
    %34 = arith.mulf %33, %12 : vector<1x128xf32>
    %35 = arith.subf %34, %13 : vector<1x128xf32>
    %36 = arith.mulf %32, %35 : vector<1x128xf32>
    %37 = arith.mulf %36, %19 : vector<1x128xf32>
    %38 = arith.mulf %37, %19 : vector<1x128xf32>
    %39 = arith.subf %30, %38 : vector<1x128xf32>
    %40 = arith.mulf %28, %28 : vector<1x128xf32>
    %cst_9 = arith.constant 2.500000e-01 : f32
    %41 = vector.broadcast %cst_9 : f32 to vector<1x128xf32>
    %42 = arith.mulf %41, %12 : vector<1x128xf32>
    %cst_10 = arith.constant 0.416666657 : f32
    %43 = vector.broadcast %cst_10 : f32 to vector<1x128xf32>
    %44 = arith.mulf %43, %13 : vector<1x128xf32>
    %45 = arith.addf %42, %44 : vector<1x128xf32>
    %cst_11 = arith.constant 0.266666681 : f32
    %46 = vector.broadcast %cst_11 : f32 to vector<1x128xf32>
    %47 = arith.mulf %46, %14 : vector<1x128xf32>
    %48 = arith.mulf %47, %19 : vector<1x128xf32>
    %49 = arith.subf %45, %48 : vector<1x128xf32>
    %50 = arith.mulf %40, %49 : vector<1x128xf32>
    %51 = arith.mulf %2, %2 : vector<3x128xf32>
    %52 = vector.extract_strided_slice %51 {offsets = [0, 0], sizes = [1, 128], strides = [1, 1]} : vector<3x128xf32> to vector<1x128xf32>
    %53 = vector.extract_strided_slice %51 {offsets = [1, 0], sizes = [1, 128], strides = [1, 1]} : vector<3x128xf32> to vector<1x128xf32>
    %54 = arith.addf %52, %53 : vector<1x128xf32>
    %55 = vector.extract_strided_slice %51 {offsets = [2, 0], sizes = [1, 128], strides = [1, 1]} : vector<3x128xf32> to vector<1x128xf32>
    %56 = arith.addf %54, %55 : vector<1x128xf32>
    %57 = vector.broadcast %39 : vector<1x128xf32> to vector<3x128xf32>
    %58 = arith.mulf %57, %51 : vector<3x128xf32>
    %59 = vector.broadcast %56 : vector<1x128xf32> to vector<3x128xf32>
    %60 = arith.divf %51, %59 : vector<3x128xf32>
    %cst_12 = arith.constant 1.000000e+00 : f32
    %61 = vector.broadcast %cst_12 : f32 to vector<3x128xf32>
    %62 = arith.subf %61, %60 : vector<3x128xf32>
    %63 = vector.broadcast %50 : vector<1x128xf32> to vector<3x128xf32>
    %64 = arith.mulf %63, %62 : vector<3x128xf32>
    %65 = arith.addf %58, %64 : vector<3x128xf32>
    %66 = tpu.concatenate %26, %2, %65 in 0 : vector<3x128xf32>, vector<3x128xf32>, vector<3x128xf32> -> vector<9x128xf32>
    %c0_13 = arith.constant 0 : index
    %c0_14 = arith.constant 0 : index
    %67 = vector.load %arg2[%c0_13, %c0_14] : memref<96x9xf32, #tpu.memory_space<vmem>>, vector<96x9xf32>
    %cst_15 = arith.constant dense<0.000000e+00> : vector<96x128xf32>
    %68 = tpu.matmul %67, %66, %cst_15 {dimension_numbers = #tpu.dot_dimension_numbers<[1], [0], [0], [1], [0, 0, 1, 1], [], []>} : vector<96x9xf32>, vector<9x128xf32>, vector<96x128xf32> -> vector<96x128xf32>
    %c0_16 = arith.constant 0 : index
    %c0_17 = arith.constant 0 : index
    %69 = vector.load %arg3[%c0_16, %c0_17] : memref<96x1xf32, #tpu.memory_space<vmem>>, vector<96x1xf32>
    %70 = vector.broadcast %69 : vector<96x1xf32> to vector<96x128xf32>
    %71 = arith.addf %68, %70 : vector<96x128xf32>
    %72 = vector.extract_strided_slice %71 {offsets = [0, 0], sizes = [48, 128], strides = [1, 1]} : vector<96x128xf32> to vector<48x128xf32>
    %73 = math.sin %72 : vector<48x128xf32>
    %74 = vector.extract_strided_slice %71 {offsets = [48, 0], sizes = [48, 128], strides = [1, 1]} : vector<96x128xf32> to vector<48x128xf32>
    %cst_18 = arith.constant -5.000000e-01 : f32
    %75 = vector.broadcast %cst_18 : f32 to vector<48x128xf32>
    %76 = arith.mulf %75, %74 : vector<48x128xf32>
    %77 = math.exp %76 : vector<48x128xf32>
    %78 = arith.mulf %73, %77 : vector<48x128xf32>
    %c0_19 = arith.constant 0 : index
    %c0_20 = arith.constant 0 : index
    %79 = vector.load %arg4[%c0_19, %c0_20] : memref<80x48xbf16, #tpu.memory_space<vmem>>, vector<80x48xbf16>
    %80 = arith.truncf %78 : vector<48x128xf32> to vector<48x128xbf16>
    %cst_21 = arith.constant dense<0.000000e+00> : vector<80x128xf32>
    %81 = tpu.matmul %79, %80, %cst_21 {dimension_numbers = #tpu.dot_dimension_numbers<[1], [0], [0], [1], [0, 0, 1, 1], [], []>} : vector<80x48xbf16>, vector<48x128xbf16>, vector<80x128xf32> -> vector<80x128xf32>
    %c0_22 = arith.constant 0 : index
    %c0_23 = arith.constant 0 : index
    %82 = vector.load %arg5[%c0_22, %c0_23] : memref<112x32xbf16, #tpu.memory_space<vmem>>, vector<112x32xbf16>
    %c0_24 = arith.constant 0 : index
    %c0_25 = arith.constant 0 : index
    %83 = vector.load %arg7[%c0_24, %c0_25] : memref<148x1xf32, #tpu.memory_space<vmem>>, vector<148x1xf32>
    %84 = vector.extract_strided_slice %81 {offsets = [0, 0], sizes = [32, 128], strides = [1, 1]} : vector<80x128xf32> to vector<32x128xf32>
    %85 = vector.extract_strided_slice %83 {offsets = [0, 0], sizes = [32, 1], strides = [1, 1]} : vector<148x1xf32> to vector<32x1xf32>
    %86 = vector.broadcast %85 : vector<32x1xf32> to vector<32x128xf32>
    %87 = arith.addf %84, %86 : vector<32x128xf32>
    %cst_26 = arith.constant 0.000000e+00 : f32
    %88 = vector.broadcast %cst_26 : f32 to vector<32x128xf32>
    %89 = arith.maximumf %87, %88 : vector<32x128xf32>
    %90 = vector.extract_strided_slice %82 {offsets = [0, 0], sizes = [32, 32], strides = [1, 1]} : vector<112x32xbf16> to vector<32x32xbf16>
    %91 = arith.truncf %89 : vector<32x128xf32> to vector<32x128xbf16>
    %cst_27 = arith.constant dense<0.000000e+00> : vector<32x128xf32>
    %92 = tpu.matmul %90, %91, %cst_27 {dimension_numbers = #tpu.dot_dimension_numbers<[1], [0], [0], [1], [0, 0, 1, 1], [], []>} : vector<32x32xbf16>, vector<32x128xbf16>, vector<32x128xf32> -> vector<32x128xf32>
    %93 = vector.extract_strided_slice %83 {offsets = [32, 0], sizes = [32, 1], strides = [1, 1]} : vector<148x1xf32> to vector<32x1xf32>
    %94 = vector.broadcast %93 : vector<32x1xf32> to vector<32x128xf32>
    %95 = arith.addf %92, %94 : vector<32x128xf32>
    %cst_28 = arith.constant 0.000000e+00 : f32
    %96 = vector.broadcast %cst_28 : f32 to vector<32x128xf32>
    %97 = arith.maximumf %95, %96 : vector<32x128xf32>
    %98 = vector.extract_strided_slice %82 {offsets = [32, 0], sizes = [32, 32], strides = [1, 1]} : vector<112x32xbf16> to vector<32x32xbf16>
    %99 = arith.truncf %97 : vector<32x128xf32> to vector<32x128xbf16>
    %cst_29 = arith.constant dense<0.000000e+00> : vector<32x128xf32>
    %100 = tpu.matmul %98, %99, %cst_29 {dimension_numbers = #tpu.dot_dimension_numbers<[1], [0], [0], [1], [0, 0, 1, 1], [], []>} : vector<32x32xbf16>, vector<32x128xbf16>, vector<32x128xf32> -> vector<32x128xf32>
    %101 = vector.extract_strided_slice %81 {offsets = [32, 0], sizes = [32, 128], strides = [1, 1]} : vector<80x128xf32> to vector<32x128xf32>
    %102 = arith.addf %100, %101 : vector<32x128xf32>
    %103 = vector.extract_strided_slice %83 {offsets = [64, 0], sizes = [32, 1], strides = [1, 1]} : vector<148x1xf32> to vector<32x1xf32>
    %104 = vector.broadcast %103 : vector<32x1xf32> to vector<32x128xf32>
    %105 = arith.addf %102, %104 : vector<32x128xf32>
    %cst_30 = arith.constant 0.000000e+00 : f32
    %106 = vector.broadcast %cst_30 : f32 to vector<32x128xf32>
    %107 = arith.maximumf %105, %106 : vector<32x128xf32>
    %108 = vector.extract_strided_slice %82 {offsets = [64, 0], sizes = [32, 32], strides = [1, 1]} : vector<112x32xbf16> to vector<32x32xbf16>
    %109 = arith.truncf %107 : vector<32x128xf32> to vector<32x128xbf16>
    %cst_31 = arith.constant dense<0.000000e+00> : vector<32x128xf32>
    %110 = tpu.matmul %108, %109, %cst_31 {dimension_numbers = #tpu.dot_dimension_numbers<[1], [0], [0], [1], [0, 0, 1, 1], [], []>} : vector<32x32xbf16>, vector<32x128xbf16>, vector<32x128xf32> -> vector<32x128xf32>
    %111 = vector.extract_strided_slice %83 {offsets = [96, 0], sizes = [32, 1], strides = [1, 1]} : vector<148x1xf32> to vector<32x1xf32>
    %112 = vector.broadcast %111 : vector<32x1xf32> to vector<32x128xf32>
    %113 = arith.addf %110, %112 : vector<32x128xf32>
    %114 = vector.extract_strided_slice %82 {offsets = [96, 0], sizes = [16, 32], strides = [1, 1]} : vector<112x32xbf16> to vector<16x32xbf16>
    %115 = arith.truncf %113 : vector<32x128xf32> to vector<32x128xbf16>
    %cst_32 = arith.constant dense<0.000000e+00> : vector<16x128xf32>
    %116 = tpu.matmul %114, %115, %cst_32 {dimension_numbers = #tpu.dot_dimension_numbers<[1], [0], [0], [1], [0, 0, 1, 1], [], []>} : vector<16x32xbf16>, vector<32x128xbf16>, vector<16x128xf32> -> vector<16x128xf32>
    %117 = vector.extract_strided_slice %81 {offsets = [64, 0], sizes = [16, 128], strides = [1, 1]} : vector<80x128xf32> to vector<16x128xf32>
    %118 = arith.addf %116, %117 : vector<16x128xf32>
    %119 = vector.extract_strided_slice %83 {offsets = [128, 0], sizes = [16, 1], strides = [1, 1]} : vector<148x1xf32> to vector<16x1xf32>
    %120 = vector.broadcast %119 : vector<16x1xf32> to vector<16x128xf32>
    %121 = arith.addf %118, %120 : vector<16x128xf32>
    %cst_33 = arith.constant 0.000000e+00 : f32
    %122 = vector.broadcast %cst_33 : f32 to vector<16x128xf32>
    %123 = arith.maximumf %121, %122 : vector<16x128xf32>
    %c0_34 = arith.constant 0 : index
    %c0_35 = arith.constant 0 : index
    %124 = vector.load %arg6[%c0_34, %c0_35] : memref<4x16xbf16, #tpu.memory_space<vmem>>, vector<4x16xbf16>
    %125 = arith.truncf %123 : vector<16x128xf32> to vector<16x128xbf16>
    %cst_36 = arith.constant dense<0.000000e+00> : vector<4x128xf32>
    %126 = tpu.matmul %124, %125, %cst_36 {dimension_numbers = #tpu.dot_dimension_numbers<[1], [0], [0], [1], [0, 0, 1, 1], [], []>} : vector<4x16xbf16>, vector<16x128xbf16>, vector<4x128xf32> -> vector<4x128xf32>
    %127 = vector.extract_strided_slice %83 {offsets = [144, 0], sizes = [4, 1], strides = [1, 1]} : vector<148x1xf32> to vector<4x1xf32>
    %128 = vector.broadcast %127 : vector<4x1xf32> to vector<4x128xf32>
    %129 = arith.addf %126, %128 : vector<4x128xf32>
    %cst_37 = arith.constant 0.000000e+00 : f32
    %130 = vector.broadcast %cst_37 : f32 to vector<4x128xf32>
    %131 = arith.subf %130, %129 : vector<4x128xf32>
    %132 = math.exp %131 : vector<4x128xf32>
    %cst_38 = arith.constant 1.000000e+00 : f32
    %133 = vector.broadcast %cst_38 : f32 to vector<4x128xf32>
    %134 = arith.addf %133, %132 : vector<4x128xf32>
    %cst_39 = arith.constant 1.000000e+00 : f32
    %135 = vector.broadcast %cst_39 : f32 to vector<4x128xf32>
    %136 = arith.divf %135, %134 : vector<4x128xf32>
    %cst_40 = arith.constant 8.000000e+00 : f32
    %137 = vector.broadcast %cst_40 : f32 to vector<4x128xf32>
    %138 = arith.cmpf ogt, %129, %137 : vector<4x128xf32>
    %cst_41 = arith.constant 8.000000e+00 : f32
    %139 = vector.broadcast %cst_41 : f32 to vector<4x128xf32>
    %140 = arith.minimumf %129, %139 : vector<4x128xf32>
    %141 = math.exp %140 : vector<4x128xf32>
    %142 = math.log1p %141 : vector<4x128xf32>
    %143 = arith.select %138, %129, %142 : vector<4x128xi1>, vector<4x128xf32>
    %144 = tpu.iota {dimensions = array<i32: 0>} : vector<4x128xi32>
    %c3_i32 = arith.constant 3 : i32
    %145 = vector.broadcast %c3_i32 : i32 to vector<4x128xi32>
    %146 = arith.cmpi slt, %144, %145 : vector<4x128xi32>
    %147 = arith.select %146, %136, %143 : vector<4x128xi1>, vector<4x128xf32>
    %c0_42 = arith.constant 0 : index
    %c0_43 = arith.constant 0 : index
    %148 = vector.load %arg8[%c0_42, %c0_43] : memref<4x128xf32, #tpu.memory_space<vmem>>, vector<4x128xf32>
    tpu.vector_store %arg8[%c0_42, %c0_43], %147 {strides = array<i32>} : memref<4x128xf32, #tpu.memory_space<vmem>>, vector<4x128xf32>,
    return
  }
  func.func @transform_0(%arg0: i32) -> (i32, i32) {
    %c0_i32 = arith.constant 0 : i32
    %c0_i32_0 = arith.constant 0 : i32
    return %c0_i32, %arg0 : i32, i32
  }
  func.func @transform_1(%arg0: i32) -> (i32, i32) {
    %c0_i32 = arith.constant 0 : i32
    %c0_i32_0 = arith.constant 0 : i32
    %c0_i32_1 = arith.constant 0 : i32
    return %c0_i32, %c0_i32_0 : i32, i32
  }
  func.func @transform_2(%arg0: i32) -> (i32, i32) {
    %c0_i32 = arith.constant 0 : i32
    %c0_i32_0 = arith.constant 0 : i32
    %c0_i32_1 = arith.constant 0 : i32
    return %c0_i32, %c0_i32_0 : i32, i32
  }
  func.func @transform_3(%arg0: i32) -> (i32, i32) {
    %c0_i32 = arith.constant 0 : i32
    %c0_i32_0 = arith.constant 0 : i32
    %c0_i32_1 = arith.constant 0 : i32
    return %c0_i32, %c0_i32_0 : i32, i32
  }
  func.func @transform_4(%arg0: i32) -> (i32, i32) {
    %c0_i32 = arith.constant 0 : i32
    %c0_i32_0 = arith.constant 0 : i32
    %c0_i32_1 = arith.constant 0 : i32
    return %c0_i32, %c0_i32_0 : i32, i32
  }
  func.func @transform_5(%arg0: i32) -> (i32, i32) {
    %c0_i32 = arith.constant 0 : i32
    %c0_i32_0 = arith.constant 0 : i32
    %c0_i32_1 = arith.constant 0 : i32
    return %c0_i32, %c0_i32_0 : i32, i32
  }
  func.func @transform_6(%arg0: i32) -> (i32, i32) {
    %c0_i32 = arith.constant 0 : i32
    %c0_i32_0 = arith.constant 0 : i32
    %c0_i32_1 = arith.constant 0 : i32
    return %c0_i32, %c0_i32_0 : i32, i32
  }
  func.func @transform_7(%arg0: i32) -> (i32, i32) {
    %c0_i32 = arith.constant 0 : i32
    %c0_i32_0 = arith.constant 0 : i32
    return %c0_i32, %arg0 : i32, i32
  }
}

</mosaic_0001>

<bundles_post_ra>
// kernel: tpu_custom_call.1
= control target key start
LH: loop header
LB: loop body
LE: loop exit
PB: predicated region body
PF: predicated region fallthrough
CT: control target
= control target key end

     0   :  { %v52_v1 = vlaneseq  ;;  %vm209_vm0 = vcmask 72704   ;;  %v1953_v18 = vmov 0   ;;  %s2761_s0 = inlined_call_operand.vmem [shape: f32[9,128], index: 0, kind: input, shape index: {}]   ;;  %s2762_s1 = inlined_call_operand.vmem [shape: f32[96,9], index: 1, kind: input, shape index: {}]   ;;  %s2763_s2 = inlined_call_operand.vmem [shape: f32[96,1], index: 2, kind: input, shape index: {}]   ;;  %s2764_s3 = inlined_call_operand.vmem [shape: bf16[80,48], index: 3, kind: input, shape index: {}]   ;;  %s2765_s4 = inlined_call_operand.vmem [shape: bf16[112,32], index: 4, kind: input, shape index: {}]   ;;  %s2766_s5 = inlined_call_operand.vmem [shape: bf16[4,16], index: 5, kind: input, shape index: {}]   ;;  %s2767_s6 = inlined_call_operand.vmem [shape: f32[148,1], index: 6, kind: input, shape index: {}]   ;;  %s2768_s7 = inlined_call_operand.hbm [shape: f32[4,128], index: 7, kind: output, shape index: {}]  }
   0x1   :  { %v2007_v0 = vld [vmem:[%s2761_s0] sm:$0xff]  ;;  %v139_v15 = vld [vmem:[%s2763_s2 + $0x10] sm:$0xff]  ;;  %1867 = vset.pattern.permute.xlu0 %v1953_v18  ;;  %1868 = vset.pattern.permute.xlu1 %v1953_v18  ;;  %v138_v23 = vld [vmem:[%s2763_s2 + $0x8] sm:$0xff] }
   0x2   :  { %v31_v2 = vrot.slane %v2007_v0, 1  ;;  %v35_v3 = vrot.slane %v2007_v0, 7  ;;  %v2013_v4 = vmul.f32 %v2007_v0, %v2007_v0  ;;  %v125_v5 = vld [vmem:[%s2762_s1] sm:$0xff]  ;;  %v2022_v9 = vshrl.u32 %v52_v1, 7  ;;  %161 = vperm.xlu1 %1868, %v139_v15   ;;  %v140_v24 = vld [vmem:[%s2763_s2 + $0x18] sm:$0xff]  ;;  %v142_v33 = vld [vmem:[%s2763_s2 + $0x28] sm:$0xff] }
   0x3   :  { %1744 = vmatprep.mubr.msk.f32.mxu0 %vm209_vm0, %v125_v5  ;;  %v137_v14 = vld [vmem:[%s2763_s2] sm:$0xff]  ;;  %v29_v26 = vld [vmem:[%s2761_s0 + $0x8] sm:$0x1]  ;;  %v143_v38 = vld [vmem:[%s2763_s2 + $0x30] sm:$0xff] }
   0x4   :  { %v33_v6 = vadd.f32 %v31_v2, %v2007_v0  ;;  %v37_v7 = vsub.f32 %v2007_v0, %v35_v3  ;;  %v94_v8 = vrot.slane %v2013_v4, 1  ;;  %v97_v13 = vrot.slane %v2013_v4, 2  ;;  %151 = vperm.xlu0 %1867, %v137_v14   ;;  %v141_v32 = vld [vmem:[%s2763_s2 + $0x20] sm:$0xff]  ;;  %v144_v43 = vld [vmem:[%s2763_s2 + $0x38] sm:$0xff]  ;;  %v146_v45 = vld [vmem:[%s2763_s2 + $0x48] sm:$0xff] }
   0x5   :  { %v107_v22 = vsub.s32 3, %v2022_v9  ;;  %v61_v34 = vmul.f32 0.57735026, %v29_v26  ;;  %v54_v36 = vsub.s32 6, %v2022_v9  ;;  %v145_v44 = vld [vmem:[%s2763_s2 + $0x40] sm:$0xff]  ;;  %v147_v51 = vld [vmem:[%s2763_s2 + $0x50] sm:$0xff] }
   0x6   :  { %v34_v10 = vmul.f32 0.5, %v33_v6  ;;  %v38_v11 = vmul.f32 0.5, %v37_v7  ;;  %v96_v12 = vadd.f32 %v94_v8, %v2013_v4  ;;  %166 = vperm.xlu1 %1868, %v140_v24   ;;  %v148_v52 = vld [vmem:[%s2763_s2 + $0x58] sm:$0xff] }
   0x8   :  { %v39_v16 = vmul.f32 %v34_v10, %v34_v10  ;;  %v40_v17 = vmul.f32 %v38_v11, %v38_v11  ;;  %v99_v21 = vadd.f32 %v97_v13, %v96_v12  ;;  %156 = vperm.xlu0 %1867, %v138_v23   ;;  %v49_v35 = vmul.f32 2.0, %v34_v10 }
   0xa   :  { %v42_v19 = vmul.f32 3.0, %v39_v16  ;;  %v44_v20 = vrot.slane %v40_v17, 1  ;;  %v64_v25 = vmul.f32 12.0, %v39_v16  ;;  %v41_v28 = vmul.f32 %v40_v17, %v40_v17  ;;  %176 = vperm.xlu1 %1868, %v142_v33  }
   0xb   :  { %v78_v30 = vmul.f32 0.41666666, %v40_v17  ;;  %v108_v31 = vrot.slane %v99_v21, %v107_v22  ;;  %v62_v37 = vmul.f32 0.33333334, %v40_v17  ;;  %v77_v41 = vmul.f32 0.25, %v39_v16 }
   0xc   :  { %v46_v27 = vadd.f32 %v44_v20, %v42_v19  ;;  %v65_v29 = vsub.f32 %v64_v25, %v44_v20  ;;  %v63_v39 = vmul.f32 0.26666668, %v41_v28  ;;  %171 = vperm.xlu0 %1867, %v141_v32   ;;  %v50_v46 = vmul.f32 %v49_v35, %v44_v20 }
   0xd   :  { %v80_v42 = vrot.slane %v78_v30, 1 }
   0xe   :  { %1881 = vrcp.f32 %v46_v27  ;;  %v67_v40 = vrot.slane %v65_v29, 7  ;;  %186 = vperm.xlu1 %1868, %v144_v43  }
   0xf   :  { %1883 = vrcp.f32 %v108_v31 }
  0x10   :  { %181 = vperm.xlu0 %1867, %v143_v38   ;;  %v69_v47 = vmul.f32 %v67_v40, %v63_v39 }
  0x12   :  { %196 = vperm.xlu1 %1868, %v146_v45  }
  0x14   :  { %191 = vperm.xlu0 %1867, %v145_v44  }
  0x18   :  { %v1882_v48 = vpop.eup %1881 }
  0x19   :  { %v51_v49 = vmul.f32 %v1882_v48, %v50_v46  ;;  %v71_v50 = vrot.slane %v1882_v48, 7 }
  0x1a   :  { %12 = vsyncpa [#allocation3], 0  ;;  %v82_v55 = vadd.f32 %v80_v42, %v77_v41  ;;  %v1884_v57 = vpop.eup %1883  ;;  %v102_v60 = vsub.s32 7, %v2022_v9  ;;  %201 = vperm.xlu0 %1867, %v147_v51   ;;  %206 = vperm.xlu1 %1868, %v148_v52   ;;  %v1163_v62 = vld [vmem:[%s2767_s6] sm:$0xff]  ;;  %v1164_v63 = vld [vmem:[%s2767_s6 + $0x8] sm:$0xff]  ;;  %v76_v2 = vmul.f32 %v61_v34, %v61_v34  ;;  %v114_v8 = vsub.s32 0, %v2022_v9 }
  0x1b   :  { %v55_v53 = vrot.slane %v51_v49, %v54_v36  ;;  %v73_v54 = vmul.f32 %v71_v50, %v69_v47  ;;  %v83_v56 = vmul.f32 %v71_v50, %v63_v39  ;;  %v110_v5 = vmul.f32 %v1884_v57, %v2013_v4  ;;  %v1165_v11 = vld [vmem:[%s2767_s6 + $0x10] sm:$0xff]  ;;  %v1166_v12 = vld [vmem:[%s2767_s6 + $0x18] sm:$0xff]  ;;  %v1167_v18 = vld [vmem:[%s2767_s6 + $0x20] sm:$0xff] }
  0x1c   :  { %v1168_v19 = vld [vmem:[%s2767_s6 + $0x28] sm:$0xff]  ;;  %vm121_vm1 = vcmask 1042432   ;;  %vm123_vm2 = vcmask 1045504   ;;  %vm246_vm3 = vcmask 1040384   ;;  %v1169_v22 = vld [vmem:[%s2767_s6 + $0x30] sm:$0xff]  ;;  %v1170_v23 = vld [vmem:[%s2767_s6 + $0x38] sm:$0xff] }
  0x1d   :  { %v74_v58 = vmul.f32 %v73_v54, %v71_v50  ;;  %v85_v59 = vrot.slane %v83_v56, 1  ;;  %v56_v61 = vmul.f32 %v55_v53, %v2007_v0  ;;  %v111_v14 = vsub.f32 1.0, %v110_v5  ;;  %v1172_v27 = vld [vmem:[%s2767_s6 + $0x48] sm:$0xff]  ;;  %v127_v29 = vld [vmem:[%s2762_s1 + $0x10] sm:$0xff]  ;;  %v1174_v31 = vld [vmem:[%s2767_s6 + $0x58] sm:$0xff] }
  0x1e   :  { %1184 = vperm.xlu0 %1867, %v1163_v62   ;;  %1189 = vperm.xlu1 %1868, %v1164_v63   ;;  %vm1954_vm4 = vmmov 1   ;;  %v126_v28 = vld [vmem:[%s2762_s1 + $0x8] sm:$0xff]  ;;  %v1173_v30 = vld [vmem:[%s2767_s6 + $0x50] sm:$0xff]  ;;  %v128_v32 = vld [vmem:[%s2762_s1 + $0x18] sm:$0xff] }
  0x1f   :  { %v75_v1 = vsub.f32 %v62_v37, %v74_v58  ;;  %v87_v3 = vsub.f32 %v82_v55, %v85_v59  ;;  %v58_v10 = vrot.slane %v56_v61, 3  ;;  %vm1827_vm5 = vmpackc.low %vm246_vm3, %vm1954_vm4  ;;  %v129_v33 = vld [vmem:[%s2762_s1 + $0x20] sm:$0xff]  ;;  %v1176_v35 = vld [vmem:[%s2767_s6 + $0x68] sm:$0xff] }
  0x20   :  { %v1175_v34 = vld [vmem:[%s2767_s6 + $0x60] sm:$0xff]  ;;  %v130_v36 = vld [vmem:[%s2762_s1 + $0x28] sm:$0xff]  ;;  %v131_v37 = vld [vmem:[%s2762_s1 + $0x30] sm:$0xff] }
  0x21   :  { %v89_v6 = vrot.slane %v87_v3, 6  ;;  %v103_v7 = vrot.slane %v75_v1, %v102_v60  ;;  %v60_v17 = vadd.f32 %v58_v10, %v2007_v0  ;;  %v1177_v38 = vld [vmem:[%s2767_s6 + $0x70] sm:$0xff]  ;;  %v1178_v39 = vld [vmem:[%s2767_s6 + $0x78] sm:$0xff]  ;;  %v133_v41 = vld [vmem:[%s2762_s1 + $0x40] sm:$0xff] }
  0x22   :  { %1194 = vperm.xlu0 %1867, %v1165_v11   ;;  %1199 = vperm.xlu1 %1868, %v1166_v12   ;;  %v132_v40 = vld [vmem:[%s2762_s1 + $0x38] sm:$0xff]  ;;  %v1179_v42 = vld [vmem:[%s2767_s6 + $0x80] sm:$0xff]  ;;  %v1180_v43 = vld [vmem:[%s2767_s6 + $0x88] sm:$0xff] }
  0x23   :  { %v91_v13 = vmul.f32 %v89_v6, %v76_v2  ;;  %v104_v15 = vmul.f32 %v103_v7, %v2013_v4  ;;  %v122_v4 = vsel %vm121_vm1, %v60_v17, %v2007_v0  ;;  %v1171_v0 = vld [vmem:[%s2767_s6 + $0x40] sm:$0xff]  ;;  %v134_v44 = vld [vmem:[%s2762_s1 + $0x48] sm:$0xff]  ;;  %v135_v45 = vld [vmem:[%s2762_s1 + $0x50] sm:$0xff] }
  0x24   :  { %v1181_v46 = vld [vmem:[%s2767_s6 + $0x90] sm:$0xf]  ;;  %v136_v47 = vld [vmem:[%s2762_s1 + $0x58] sm:$0xff] }
  0x25   :  { %v115_v16 = vrot.slane %v91_v13, %v114_v8 }
  0x26   :  { %1214 = vperm.xlu0 %1867, %v1167_v18   ;;  %1219 = vperm.xlu1 %1868, %v1168_v19  }
  0x27   :  { %v116_v20 = vmul.f32 %v115_v16, %v111_v14 }
  0x29   :  { %v117_v21 = vadd.f32 %v116_v20, %v104_v15 }
  0x2a   :  { %1224 = vperm.xlu0 %1867, %v1169_v22   ;;  %1229 = vperm.xlu1 %1868, %v1170_v23  }
  0x2b   :  { %v119_v24 = vrot.slane %v117_v21, 5 }
  0x2d   :  { %v124_v25 = vsel %vm123_vm2, %v122_v4, %v119_v24 }
  0x2e   :  { %v1826_v26 = vpack.c.bf16 %v119_v24, %v124_v25  ;;  %1371 = vperm.xlu0 %1867, %v1171_v0   ;;  %1376 = vperm.xlu1 %1868, %v1172_v27  }
  0x30   :  { %1828 = vmatprep.subr.msk.bf16.mxu0 %vm1827_vm5, %v1826_v26 }
  0x31   :  { %1831 = vmatpush3.bf16.msk.msra.mxu0 %vm1827_vm5, %v1826_v26 }
  0x32   :  { %1381 = vperm.xlu0 %1867, %v1173_v30   ;;  %1386 = vperm.xlu1 %1868, %v1174_v31   ;;  %v1955_v31 = vmov 683565275  }
  0x34   :  { %1745 = vmatmul.mubr.msk.f32.vlgmr.msra.gmra.mrb[0].mxu0 %vm209_vm0, %v126_v28 }
  0x35   :  { %1747 = vmatprep.mubr.msk.f32.mxu0 %vm209_vm0, %v127_v29 }
  0x36   :  { %1401 = vperm.xlu0 %1867, %v1175_v34   ;;  %1406 = vperm.xlu1 %1868, %v1176_v35  }
  0x38   :  { %1748 = vmatmul.mubr.msk.f32.gmra.mrb[2].mxu0 %vm209_vm0, %v128_v32 }
  0x39   :  { %1750 = vmatprep.mubr.msk.f32.mxu0 %vm209_vm0, %v129_v33  ;;  %v1956_v33 = vmov 2475754826  }
  0x3a   :  { %1411 = vperm.xlu0 %1867, %v1177_v38   ;;  %1416 = vperm.xlu1 %1868, %v1178_v39   ;;  %v1958_v38 = vmov 2102212464  }
  0x3c   :  { %1751 = vmatmul.mubr.msk.f32.gmra.mrb[4].mxu0 %vm209_vm0, %v130_v36  ;;  %v1957_v36 = vmov 2131351028  }
  0x3d   :  { %1753 = vmatprep.mubr.msk.f32.mxu0 %vm209_vm0, %v131_v37 }
  0x3e   :  { %1537 = vperm.xlu0 %1867, %v1179_v42   ;;  %1542 = vperm.xlu1 %1868, %v1180_v43  }
  0x40   :  { %1754 = vmatmul.mubr.msk.f32.gmra.mrb[6].mxu0 %vm209_vm0, %v132_v40  ;;  %v1959_v40 = vmov 920167782  }
  0x41   :  { %1756 = vmatprep.mubr.msk.f32.mxu0 %vm209_vm0, %v133_v41 }
  0x42   :  { %1553 = vperm.xlu0 %1867, %v1181_v46  }
  0x44   :  { %1757 = vmatmul.mubr.msk.f32.gmra.mrb[8].mxu0 %vm209_vm0, %v134_v44 }
  0x45   :  { %1759 = vmatprep.mubr.msk.f32.mxu0 %vm209_vm0, %v135_v45 }
  0x48   :  { %1760 = vmatmul.mubr.msk.f32.gmra.mrb[10].mxu0 %vm209_vm0, %v136_v47 }
  0x81   :  { %v162_v49 = vpop.permute.xlu1 %161 }
  0x83   :  { %v152_v48 = vpop.permute.xlu0 %151 }
  0x85   :  { %v167_v57 = vpop.permute.xlu1 %166 }
  0x87   :  { %v157_v50 = vpop.permute.xlu0 %156 }
 0x107   :  { %v1746_v51 = vpop.f32.mrb[0].mxu0 }
 0x108   :  { %v2175_v52 = vadd.f32 %v1746_v51, %v157_v50  ;;  %v315_v53 = vpop.f32.mrb[1].mxu0 }
 0x109   :  { %v2177_v54 = vadd.f32 %v315_v53, %v152_v48 }
 0x10a   :  { %v478_v55 = vand.u32 2147483647, %v2175_v52  ;;  %v481_v56 = vand.u32 2139095040, %v2175_v52 }
 0x10b   :  { %v374_v58 = vand.u32 2147483647, %v2177_v54  ;;  %v377_v59 = vand.u32 2139095040, %v2177_v54  ;;  %v1749_v60 = vpop.f32.mrb[2].mxu0 }
 0x10c   :  { %v482_v61 = vshrl.u32 %v481_v56, 23  ;;  %v485_v62 = vand.u32 8388607, %v478_v55  ;;  %v2185_v63 = vadd.f32 %v1749_v60, %v167_v57  ;;  %v325_v1 = vpop.f32.mrb[3].mxu0 }
 0x10d   :  { %v378_v2 = vshrl.u32 %v377_v59, 23  ;;  %v381_v3 = vand.u32 8388607, %v374_v58  ;;  %v2191_v10 = vadd.f32 %v325_v1, %v162_v49  ;;  %v1960_v49 = vmov 1326507024  }
 0x10e   :  { %v1656_v5 = vadd.s32 4294967169, %v482_v61  ;;  %v686_v6 = vand.u32 2147483647, %v2185_v63  ;;  %v689_v8 = vand.u32 2139095040, %v2185_v63  ;;  %v486_v12 = vor.u32 8388608, %v485_v62 }
 0x10f   :  { %v1652_v7 = vadd.s32 4294967169, %v378_v2  ;;  %v2193_v11 = vpop.f32.mrb[4].mxu0  ;;  %v382_v14 = vor.u32 8388608, %v381_v3  ;;  %v582_v21 = vand.u32 2147483647, %v2191_v10 }
 0x110   :  { %v488_v13 = vadd.s32 1, %v1656_v5  ;;  %v690_v16 = vshrl.u32 %v689_v8, 23  ;;  %v2197_v17 = vand.u32 8388607, %v686_v6  ;;  %v2199_v18 = vpop.f32.mrb[5].mxu0  ;;  %v2204_v24 = vshll.u32 %v486_v12, 8 }
 0x111   :  { %v384_v15 = vadd.s32 1, %v1652_v7  ;;  %v2212_v28 = vshll.u32 %v382_v14, 8 }
 0x112   :  { %vm489_vm6 = vcmp.gt.s32.totalorder %v488_v13, 0  ;;  %v1664_v20 = vadd.s32 4294967169, %v690_v16  ;;  %v694_v29 = vor.u32 8388608, %v2197_v17 }
 0x113   :  { %v490_v19 = vsel %vm489_vm6, %v488_v13, 0  ;;  %vm385_vm7 = vcmp.gt.s32.totalorder %v384_v15, 0  ;;  %v2202_v4 = vpop.f32.mrb[6].mxu0 }
 0x114   :  { %v491_v22 = vshrl.u32 %v490_v19, 5  ;;  %v492_v23 = vand.u32 31, %v490_v19  ;;  %v386_v25 = vsel %vm385_vm7, %v384_v15, 0  ;;  %v2206_v26 = vpop.f32.mrb[7].mxu0  ;;  %v2217_v35 = vadd.s32 1, %v1664_v20 }
 0x115   :  { %v2208_v0 = vshrl.u32 %v386_v25, 5  ;;  %v2210_v27 = vand.u32 31, %v386_v25 }
 0x116   :  { %v493_v30 = vsub.s32 32, %v492_v23  ;;  %v495_v32 = vshll.u32 %v1955_v31, %v492_v23  ;;  %v498_v34 = vshll.u32 %v1956_v33, %v492_v23  ;;  %v501_v37 = vshll.u32 %v1957_v36, %v492_v23 }
 0x117   :  { %v504_v39 = vshll.u32 %v1958_v38, %v492_v23  ;;  %v507_v41 = vshll.u32 %v1959_v40, %v492_v23  ;;  %vm510_vm8 = vcmp.lt.s32.totalorder %v491_v22, 1  ;;  %v2222_v42 = vpop.f32.mrb[8].mxu0  ;;  %vm511_vm9 = vcmp.lt.s32.totalorder %v491_v22, 2 }
 0x118   :  { %v496_v43 = vshrl.u32 %v1956_v33, %v493_v30  ;;  %v499_v44 = vshrl.u32 %v1957_v36, %v493_v30  ;;  %v502_v45 = vshrl.u32 %v1958_v38, %v493_v30  ;;  %v2227_v46 = vpop.f32.mrb[9].mxu0  ;;  %v494_v47 = vshrl.u32 %v1955_v31, %v493_v30 }
 0x119   :  { %v505_v48 = vshrl.u32 %v1959_v40, %v493_v30  ;;  %v508_v50 = vshrl.u32 %v1960_v49, %v493_v30  ;;  %vm512_vm10 = vcmp.lt.s32.totalorder %v491_v22, 3  ;;  %v389_v57 = vsub.s32 32, %v2210_v27 }
 0x11a   :  { %v497_v51 = vor.u32 %v496_v43, %v495_v32  ;;  %v500_v53 = vor.u32 %v499_v44, %v498_v34  ;;  %v503_v56 = vor.u32 %v502_v45, %v501_v37  ;;  %vm513_vm11 = vcmp.lt.s32.totalorder %v491_v22, 4 }
 0x11b   :  { %v506_v59 = vor.u32 %v505_v48, %v504_v39  ;;  %v509_v60 = vor.u32 %v508_v50, %v507_v41  ;;  %v391_v61 = vshll.u32 %v1955_v31, %v2210_v27  ;;  %v2235_v62 = vpop.f32.mrb[10].mxu0  ;;  %v394_v14 = vshll.u32 %v1956_v33, %v2210_v27 }
 0x11c   :  { %v514_v1 = vsel %vm510_vm8, %v494_v47, %v497_v51  ;;  %v515_v2 = vsel %vm513_vm11, %v503_v56, 2102212464  ;;  %v518_v3 = vsel %vm510_vm8, %v497_v51, %v500_v53  ;;  %v522_v5 = vsel %vm510_vm8, %v500_v53, %v503_v56  ;;  %v2240_v7 = vpop.f32.mrb[11].mxu0 }
 0x11d   :  { %v516_v8 = vsel %vm512_vm10, %v500_v53, %v515_v2  ;;  %v519_v12 = vsel %vm513_vm11, %v506_v59, 920167782  ;;  %v523_v13 = vsel %vm513_vm11, %v509_v60, 1326507024  ;;  %v390_v19 = vshrl.u32 %v1955_v31, %v389_v57 }
 0x11e   :  { %v520_v15 = vsel %vm512_vm10, %v503_v56, %v519_v12  ;;  %v524_v16 = vsel %vm512_vm10, %v506_v59, %v523_v13  ;;  %v392_v20 = vshrl.u32 %v1956_v33, %v389_v57  ;;  %v517_v23 = vsel %vm511_vm9, %v514_v1, %v516_v8 }
 0x11f   :  { %v521_v25 = vsel %vm511_vm9, %v518_v3, %v520_v15  ;;  %v525_v30 = vsel %vm511_vm9, %v522_v5, %v524_v16  ;;  %v395_v32 = vshrl.u32 %v1957_v36, %v389_v57  ;;  %v397_v45 = vshll.u32 %v1957_v36, %v2210_v27 }
 0x120   :  { %v2254_v34 = vmul.u32.u64.low %v2204_v24, %v525_v30  ;;  %v2255_v37 = vmul.u32.u64.high %v2204_v24, %v525_v30, %v2254_v34  ;;  %v2258_v39 = vmul.u32.u64.low %v2204_v24, %v521_v25  ;;  %v2259_v41 = vmul.u32.u64.high %v2204_v24, %v521_v25, %v2258_v39 }
 0x121   :  { %v393_v43 = vor.u32 %v392_v20, %v391_v61  ;;  %v396_v44 = vor.u32 %v395_v32, %v394_v14  ;;  %v398_v47 = vshrl.u32 %v1958_v38, %v389_v57  ;;  %v533_v22 = vmul.u32 %v2204_v24, %v517_v23 }
 0x122   :  { %v400_v48 = vshll.u32 %v1958_v38, %v2210_v27  ;;  %v401_v50 = vshrl.u32 %v1959_v40, %v389_v57  ;;  %v404_v51 = vshrl.u32 %v1960_v49, %v389_v57  ;;  %v403_v56 = vshll.u32 %v1959_v40, %v2210_v27 }
 0x123   :  { %v399_v53 = vor.u32 %v398_v47, %v397_v45  ;;  %vm406_vm12 = vcmp.lt.s32.totalorder %v2208_v0, 1  ;;  %vm407_vm13 = vcmp.lt.s32.totalorder %v2208_v0, 2  ;;  %vm535_vm14 = vc.u32 %v2255_v37, %v2258_v39 }
 0x124   :  { %v536_v59 = vadd.s32 1, %v2259_v41  ;;  %v402_v24 = vor.u32 %v401_v50, %v400_v48  ;;  %vm408_vm15 = vcmp.lt.s32.totalorder %v2208_v0, 3  ;;  %v405_v60 = vor.u32 %v404_v51, %v403_v56 }
 0x125   :  { %vm409_vm0 = vcmp.lt.s32.totalorder %v2208_v0, 4  ;;  %v410_v61 = vsel %vm406_vm12, %v390_v19, %v393_v43  ;;  %v414_v57 = vsel %vm406_vm12, %v393_v43, %v396_v44  ;;  %v418_v3 = vsel %vm406_vm12, %v396_v44, %v399_v53 }
 0x126   :  { %v537_v1 = vsel %vm535_vm14, %v536_v59, %v2259_v41  ;;  %v411_v2 = vsel %vm409_vm0, %v399_v53, 2102212464  ;;  %v415_v27 = vsel %vm409_vm0, %v402_v24, 920167782  ;;  %v419_v13 = vsel %vm409_vm0, %v405_v60, 1326507024 }
 0x127   :  { %v538_v5 = vadd.s32 %v537_v1, %v533_v22  ;;  %v412_v8 = vsel %vm408_vm15, %v396_v44, %v411_v2  ;;  %v416_v12 = vsel %vm408_vm15, %v399_v53, %v415_v27  ;;  %v420_v15 = vsel %vm408_vm15, %v402_v24, %v419_v13 }
 0x128   :  { %v417_v14 = vsel %vm407_vm13, %v414_v57, %v416_v12  ;;  %vm697_vm1 = vcmp.gt.s32.totalorder %v2217_v35, 0  ;;  %v585_v16 = vand.u32 2139095040, %v2191_v10  ;;  %v421_v19 = vsel %vm407_vm13, %v418_v3, %v420_v15 }
 0x129   :  { %v539_v20 = vadd.s32 536870912, %v538_v5  ;;  %v2285_v23 = vmul.u32.u64.low %v2212_v28, %v417_v14  ;;  %v2286_v25 = vmul.u32.u64.high %v2212_v28, %v417_v14, %v2285_v23  ;;  %v413_v30 = vsel %vm407_vm13, %v410_v61, %v412_v8 }
 0x12a   :  { %v2292_v32 = vmul.u32.u64.low %v2212_v28, %v421_v19  ;;  %v2293_v34 = vmul.u32.u64.high %v2212_v28, %v421_v19, %v2292_v32  ;;  %v698_v41 = vsel %vm697_vm1, %v2217_v35, 0  ;;  %v2299_v45 = vadd.s32 %v2258_v39, %v2255_v37 }
 0x12b   :  { %v2296_v43 = vshrl.u32 %v539_v20, 30  ;;  %v700_v44 = vand.u32 31, %v698_v41  ;;  %v2303_v47 = vshll.u32 %v694_v29, 8  ;;  %v586_v22 = vshrl.u32 %v585_v16, 23 }
 0x12c   :  { %v2307_v0 = vand.u32 8388607, %v582_v21  ;;  %v429_v50 = vmul.u32 %v2212_v28, %v413_v30  ;;  %v432_v35 = vadd.s32 1, %v2286_v25  ;;  %vm431_vm2 = vc.u32 %v2293_v34, %v2285_v23 }
 0x12d   :  { %v541_v48 = vshll.u32 %v2296_v43, 30  ;;  %v701_v51 = vsub.s32 32, %v700_v44  ;;  %v699_v37 = vshrl.u32 %v698_v41, 5  ;;  %v703_v17 = vshll.u32 %v1955_v31, %v700_v44 }
 0x12e   :  { %v706_v29 = vshll.u32 %v1956_v33, %v700_v44  ;;  %v433_v53 = vsel %vm431_vm2, %v432_v35, %v2286_v25  ;;  %v709_v59 = vshll.u32 %v1957_v36, %v700_v44  ;;  %v712_v61 = vshll.u32 %v1958_v38, %v700_v44 }
 0x12f   :  { %v2316_v39 = vsub.s32 %v538_v5, %v541_v48  ;;  %v704_v56 = vshrl.u32 %v1956_v33, %v701_v51  ;;  %v434_v28 = vadd.s32 %v433_v53, %v429_v50  ;;  %v707_v24 = vshrl.u32 %v1957_v36, %v701_v51 }
 0x130   :  { %v710_v60 = vshrl.u32 %v1958_v38, %v701_v51  ;;  %v713_v2 = vshrl.u32 %v1959_v40, %v701_v51  ;;  %v715_v27 = vshll.u32 %v1959_v40, %v700_v44  ;;  %v716_v12 = vshrl.u32 %v1960_v49, %v701_v51 }
 0x131   :  { %v544_v57 = vsub.s32 0, %v2316_v39  ;;  %v705_v1 = vor.u32 %v704_v56, %v703_v17  ;;  %v435_v3 = vadd.s32 536870912, %v434_v28  ;;  %v708_v5 = vor.u32 %v707_v24, %v706_v29 }
 0x132   :  { %v711_v8 = vor.u32 %v710_v60, %v709_v59  ;;  %v702_v14 = vshrl.u32 %v1955_v31, %v701_v51  ;;  %v714_v15 = vor.u32 %v713_v2, %v712_v61  ;;  %v1660_v16 = vadd.s32 4294967169, %v586_v22 }
 0x133   :  { %v1657_v13 = vmin.u32 %v544_v57, %v2316_v39  ;;  %v2330_v20 = vshrl.u32 %v435_v3, 30  ;;  %v717_v19 = vor.u32 %v716_v12, %v715_v27  ;;  %vm718_vm3 = vcmp.lt.s32.totalorder %v699_v37, 1 }
 0x134   :  { %vm721_vm4 = vcmp.lt.s32.totalorder %v699_v37, 4  ;;  %vm719_vm5 = vcmp.lt.s32.totalorder %v699_v37, 2  ;;  %v726_v32 = vsel %vm718_vm3, %v705_v1, %v708_v5  ;;  %vm720_vm6 = vcmp.lt.s32.totalorder %v699_v37, 3 }
 0x135   :  { %v546_v25 = vclz %v1657_v13  ;;  %v723_v30 = vsel %vm721_vm4, %v711_v8, 2102212464  ;;  %v437_v41 = vshll.u32 %v2330_v20, 30  ;;  %v727_v44 = vsel %vm721_vm4, %v714_v15, 920167782 }
 0x136   :  { %v730_v48 = vsel %vm718_vm3, %v708_v5, %v711_v8  ;;  %v722_v35 = vsel %vm718_vm3, %v702_v14, %v705_v1  ;;  %v728_v17 = vsel %vm720_vm6, %v711_v8, %v727_v44  ;;  %v731_v51 = vsel %vm721_vm4, %v717_v19, 1326507024 }
 0x137   :  { %v1658_v50 = vadd.s32 4294967294, %v546_v25  ;;  %v2333_v29 = vsub.s32 %v434_v28, %v437_v41  ;;  %v724_v22 = vsel %vm720_vm6, %v708_v5, %v723_v30  ;;  %v729_v53 = vsel %vm719_vm5, %v726_v32, %v728_v17  ;;  %v177_v41 = vpop.permute.xlu1 %176 }
 0x138   :  { %v732_v56 = vsel %vm720_vm6, %v714_v15, %v731_v51  ;;  %v2338_v24 = vmul.u32.u64.low %v2303_v47, %v729_v53  ;;  %v2339_v60 = vmul.u32.u64.high %v2303_v47, %v729_v53, %v2338_v24  ;;  %v725_v3 = vsel %vm719_vm5, %v722_v35, %v724_v22 }
 0x139   :  { %vm1659_vm7 = vcmp.lt.s32.totalorder %v1658_v50, 0  ;;  %v733_v59 = vsel %vm719_vm5, %v730_v48, %v732_v56  ;;  %v440_v57 = vsub.s32 0, %v2333_v29  ;;  %v592_v5 = vadd.s32 1, %v1660_v16 }
 0x13a   :  { %v549_v61 = vsel %vm1659_vm7, 0, %v1658_v50  ;;  %v2344_v1 = vmul.u32.u64.low %v2303_v47, %v733_v59  ;;  %v2345_v2 = vmul.u32.u64.high %v2303_v47, %v733_v59, %v2344_v1  ;;  %v744_v15 = vadd.s32 1, %v2339_v60 }
 0x13b   :  { %v550_v28 = vsub.s32 32, %v549_v61  ;;  %v554_v27 = vsub.s32 4294967266, %v549_v61  ;;  %v551_v8 = vshll.u32 %v2316_v39, %v549_v61  ;;  %v1653_v12 = vmin.u32 %v440_v57, %v2333_v29 }
 0x13c   :  { %vm593_vm8 = vcmp.gt.s32.totalorder %v592_v5, 0  ;;  %v741_v25 = vmul.u32 %v2303_v47, %v725_v3  ;;  %vm743_vm9 = vc.u32 %v2345_v2, %v2338_v24  ;;  %v590_v39 = vor.u32 8388608, %v2307_v0 }
 0x13d   :  { %v552_v13 = vshrl.u32 %v2299_v45, %v550_v28  ;;  %v555_v14 = vadd.s32 127, %v554_v27  ;;  %v442_v19 = vclz %v1653_v12  ;;  %v594_v30 = vsel %vm593_vm8, %v592_v5, 0 }
 0x13e   :  { %v745_v16 = vsel %vm743_vm9, %v744_v15, %v2339_v60  ;;  %v596_v48 = vand.u32 31, %v594_v30  ;;  %vm2359_vm10 = vcmp.le.f32.partialorder %v478_v55, 0.7853982  ;;  %vm480_vm11 = vcmp.lt.s32.totalorder %v2175_v52, 0 }
 0x13f   :  { %v553_v37 = vor.u32 %v552_v13, %v551_v8  ;;  %v556_v32 = vshll.u32 %v555_v14, 23  ;;  %v1654_v44 = vadd.s32 4294967294, %v442_v19  ;;  %v746_v45 = vadd.s32 %v745_v16, %v741_v25 }
 0x140   :  { %v2365_v35 = vadd.f32 %v2193_v11, %v177_v41  ;;  %v430_v17 = vadd.s32 %v2285_v23, %v2293_v34  ;;  %v597_v51 = vsub.s32 32, %v596_v48  ;;  %v2369_v59 = vshll.u32 %v590_v39, 8 }
 0x141   :  { %v557_v47 = vor.u32 4788187, %v556_v32  ;;  %vm1655_vm12 = vcmp.lt.s32.totalorder %v1654_v44, 0  ;;  %v747_v0 = vadd.s32 536870912, %v746_v45  ;;  %v560_v53 = vcvt.s32.f32 %v553_v37 }
 0x142   :  { %v445_v56 = vsel %vm1655_vm12, 0, %v1654_v44  ;;  %v2373_v57 = vshrl.u32 %v594_v30, 5  ;;  %v599_v11 = vshll.u32 %v1955_v31, %v596_v48  ;;  %v600_v28 = vshrl.u32 %v1956_v33, %v597_v51 }
 0x143   :  { %v558_v22 = vand.u32 2147483647, %v557_v47  ;;  %v446_v55 = vsub.s32 32, %v445_v56  ;;  %v450_v60 = vsub.s32 4294967266, %v445_v56  ;;  %v2371_v61 = vshrl.u32 %v747_v0, 30 }
 0x144   :  { %v603_v23 = vshrl.u32 %v1957_v36, %v597_v51  ;;  %v602_v5 = vshll.u32 %v1956_v33, %v596_v48  ;;  %v447_v12 = vshll.u32 %v2333_v29, %v445_v56  ;;  %v605_v13 = vshll.u32 %v1957_v36, %v596_v48 }
 0x145   :  { %v561_v1 = vmul.f32 %v560_v53, %v558_v22  ;;  %v448_v34 = vshrl.u32 %v430_v17, %v446_v55  ;;  %v451_v27 = vadd.s32 127, %v450_v60  ;;  %v749_v3 = vshll.u32 %v2371_v61, 30 }
 0x146   :  { %v606_v14 = vshrl.u32 %v1958_v38, %v597_v51  ;;  %v601_v25 = vor.u32 %v600_v28, %v599_v11  ;;  %v604_v30 = vor.u32 %v603_v23, %v602_v5  ;;  %v608_v16 = vshll.u32 %v1958_v38, %v596_v48 }
 0x147   :  { %v562_v8 = vxor.u32 2147483648, %v561_v1  ;;  %v452_v15 = vshll.u32 %v451_v27, 23  ;;  %v2383_v19 = vsub.s32 %v746_v45, %v749_v3  ;;  %v449_v32 = vor.u32 %v448_v34, %v447_v12 }
 0x148   :  { %v609_v39 = vshrl.u32 %v1959_v40, %v597_v51  ;;  %v607_v45 = vor.u32 %v606_v14, %v605_v13  ;;  %v611_v17 = vshll.u32 %v1959_v40, %v596_v48  ;;  %v612_v0 = vshrl.u32 %v1960_v49, %v597_v51 }
 0x149   :  { %v563_v37 = vsel %vm480_vm11, %v562_v8, %v561_v1  ;;  %v453_v41 = vor.u32 4788187, %v452_v15  ;;  %v752_v44 = vsub.s32 0, %v2383_v19  ;;  %vm614_vm13 = vcmp.lt.s32.totalorder %v2373_v57, 1 }
 0x14a   :  { %v2392_v29 = vsel %vm2359_vm10, %v2175_v52, %v563_v37  ;;  %v610_v47 = vor.u32 %v609_v39, %v608_v16  ;;  %v598_v56 = vshrl.u32 %v1955_v31, %v597_v51  ;;  %vm615_vm14 = vcmp.lt.s32.totalorder %v2373_v57, 2 }
 0x14b   :  { %v454_v22 = vand.u32 2147483647, %v453_v41  ;;  %v1665_v53 = vmin.u32 %v752_v44, %v2383_v19  ;;  %v456_v55 = vcvt.s32.f32 %v449_v32  ;;  %v613_v60 = vor.u32 %v612_v0, %v611_v17  ;;  %v172_v0 = vpop.permute.xlu0 %171 }
 0x14c   :  { %vm617_vm15 = vcmp.lt.s32.totalorder %v2373_v57, 4  ;;  %v622_v1 = vsel %vm614_vm13, %v601_v25, %v604_v30  ;;  %vm616_vm0 = vcmp.lt.s32.totalorder %v2373_v57, 3  ;;  %v626_v27 = vsel %vm614_vm13, %v604_v30, %v607_v45 }
 0x14d   :  { %v754_v11 = vclz %v1665_v53  ;;  %v619_v48 = vsel %vm617_vm15, %v607_v45, 2102212464  ;;  %v623_v28 = vsel %vm617_vm15, %v610_v47, 920167782  ;;  %v457_v23 = vmul.f32 %v456_v55, %v454_v22 }
 0x14e   :  { %v624_v34 = vsel %vm616_vm0, %v607_v45, %v623_v28  ;;  %v627_v51 = vsel %vm617_vm15, %v613_v60, 1326507024  ;;  %v618_v5 = vsel %vm614_vm13, %v598_v56, %v601_v25  ;;  %v620_v12 = vsel %vm616_vm0, %v604_v30, %v619_v48 }
 0x14f   :  { %v1666_v3 = vadd.s32 4294967294, %v754_v11  ;;  %v625_v8 = vsel %vm615_vm14, %v622_v1, %v624_v34  ;;  %v628_v13 = vsel %vm616_vm0, %v610_v47, %v627_v51  ;;  %v894_v32 = vand.u32 2147483647, %v2365_v35  ;;  %v187_v34 = vpop.permute.xlu1 %186 }
 0x150   :  { %v2412_v14 = vmul.u32.u64.low %v2369_v59, %v625_v8  ;;  %v2413_v15 = vmul.u32.u64.high %v2369_v59, %v625_v8, %v2412_v14  ;;  %v629_v37 = vsel %vm615_vm14, %v626_v27, %v628_v13  ;;  %v897_v16 = vand.u32 2139095040, %v2365_v35 }
 0x151   :  { %vm1667_vm1 = vcmp.lt.s32.totalorder %v1666_v3, 0  ;;  %v458_v39 = vxor.u32 2147483648, %v457_v23  ;;  %v2421_v41 = vmul.u32.u64.low %v2369_v59, %v629_v37  ;;  %v2422_v44 = vmul.u32.u64.high %v2369_v59, %v629_v37, %v2421_v41 }
 0x152   :  { %v757_v25 = vsel %vm1667_vm1, 0, %v1666_v3  ;;  %v742_v30 = vadd.s32 %v2338_v24, %v2345_v2  ;;  %v621_v17 = vsel %vm615_vm14, %v618_v5, %v620_v12  ;;  %vm376_vm2 = vcmp.lt.s32.totalorder %v2177_v54, 0 }
 0x153   :  { %v758_v45 = vsub.s32 32, %v757_v25  ;;  %v762_v47 = vsub.s32 4294967266, %v757_v25  ;;  %v640_v22 = vadd.s32 1, %v2413_v15  ;;  %v898_v53 = vshrl.u32 %v897_v16, 23 }
 0x154   :  { %v901_v60 = vand.u32 8388607, %v894_v32  ;;  %v2433_v1 = vadd.f32 %v2199_v18, %v172_v0  ;;  %v459_v24 = vsel %vm376_vm2, %v458_v39, %v457_v23  ;;  %v637_v2 = vmul.u32 %v2369_v59, %v621_v17 }
 0x155   :  { %v760_v56 = vshrl.u32 %v742_v30, %v758_v45  ;;  %v763_v55 = vadd.s32 127, %v762_v47  ;;  %vm639_vm3 = vc.u32 %v2422_v44, %v2412_v14  ;;  %v1672_v57 = vadd.s32 4294967169, %v898_v53 }
 0x156   :  { %v759_v11 = vshll.u32 %v2383_v19, %v757_v25  ;;  %v641_v28 = vsel %vm639_vm3, %v640_v22, %v2413_v15  ;;  %vm2444_vm4 = vcmp.le.f32.partialorder %v374_v58, 0.7853982  ;;  %v902_v3 = vor.u32 8388608, %v901_v60 }
 0x157   :  { %v764_v48 = vshll.u32 %v763_v55, 23  ;;  %v642_v27 = vadd.s32 %v641_v28, %v637_v2  ;;  %v904_v23 = vadd.s32 1, %v1672_v57  ;;  %v462_v59 = vsel %vm2444_vm4, %v2177_v54, %v459_v24 }
 0x158   :  { %v761_v51 = vor.u32 %v760_v56, %v759_v11  ;;  %v351_v19 = vadd.f32 %v2202_v4, %v187_v34  ;;  %1885 = vcosq.f32 %v2392_v29  ;;  %v790_v8 = vand.u32 2147483647, %v2433_v1 }
 0x159   :  { %v643_v5 = vadd.s32 536870912, %v642_v27  ;;  %vm905_vm5 = vcmp.gt.s32.totalorder %v904_v23, 0  ;;  %1887 = vsinq.f32 %v2392_v29  ;;  %v765_v58 = vor.u32 4788187, %v764_v48 }
 0x15a   :  { %v906_v12 = vsel %vm905_vm5, %v904_v23, 0  ;;  %v793_v13 = vand.u32 2139095040, %v2433_v1  ;;  %1889 = vcosq.f32 %v462_v59  ;;  %v768_v16 = vcvt.s32.f32 %v761_v51 }
 0x15b   :  { %v2456_v15 = vshrl.u32 %v643_v5, 30  ;;  %v908_v37 = vand.u32 31, %v906_v12  ;;  %1891 = vsinq.f32 %v462_v59  ;;  %v2458_v39 = vshll.u32 %v902_v3, 8 }
 0x15c   :  { %v2463_v41 = vand.u32 8388607, %v790_v8  ;;  %v999_v29 = vmul.f32 -0.5, %v351_v19  ;;  %v766_v30 = vand.u32 2147483647, %v765_v58  ;;  %v907_v45 = vshrl.u32 %v906_v12, 5 }
 0x15d   :  { %v645_v4 = vshll.u32 %v2456_v15, 30  ;;  %v909_v25 = vsub.s32 32, %v908_v37  ;;  %v911_v47 = vshll.u32 %v1955_v31, %v908_v37  ;;  %v794_v17 = vshrl.u32 %v793_v13, 23 }
 0x15e   :  { %v914_v53 = vshll.u32 %v1956_v33, %v908_v37  ;;  %v917_v56 = vshll.u32 %v1957_v36, %v908_v37  ;;  %v920_v24 = vshll.u32 %v1958_v38, %v908_v37  ;;  %v798_v48 = vor.u32 8388608, %v2463_v41 }
 0x15f   :  { %v2466_v0 = vsub.s32 %v642_v27, %v645_v4  ;;  %v912_v22 = vshrl.u32 %v1956_v33, %v909_v25  ;;  %v915_v55 = vshrl.u32 %v1957_v36, %v909_v25  ;;  %v918_v60 = vshrl.u32 %v1958_v38, %v909_v25 }
 0x160   :  { %v921_v2 = vshrl.u32 %v1959_v40, %v909_v25  ;;  %v1006_v28 = vmul.f32 1.442695, %v999_v29  ;;  %v1668_v59 = vadd.s32 4294967169, %v794_v17  ;;  %v2479_v3 = vmul.f32 %v768_v16, %v766_v30 }
 0x161   :  { %v648_v57 = vsub.s32 0, %v2466_v0  ;;  %v913_v11 = vor.u32 %v912_v22, %v911_v47  ;;  %v916_v34 = vor.u32 %v915_v55, %v914_v53  ;;  %v919_v27 = vor.u32 %v918_v60, %v917_v56 }
 0x162   :  { %v922_v23 = vor.u32 %v921_v2, %v920_v24  ;;  %v2477_v51 = vpop.eup %1885  ;;  %v923_v5 = vshll.u32 %v1959_v40, %v908_v37  ;;  %v924_v58 = vshrl.u32 %v1960_v49, %v909_v25  ;;  %v910_v13 = vshrl.u32 %v1955_v31, %v909_v25 }
 0x163   :  { %v1661_v19 = vmin.u32 %v648_v57, %v2466_v0  ;;  %v2484_v12 = vpop.eup %1887  ;;  %vm926_vm6 = vcmp.lt.s32.totalorder %v907_v45, 1  ;;  %vm927_vm7 = vcmp.lt.s32.totalorder %v907_v45, 2  ;;  %vm929_vm8 = vcmp.lt.s32.totalorder %v907_v45, 4 }
 0x164   :  { %v2487_v4 = vpop.eup %1889  ;;  %v925_v29 = vor.u32 %v924_v58, %v923_v5  ;;  %v931_v47 = vsel %vm929_vm8, %v919_v27, 2102212464  ;;  %v934_v16 = vsel %vm926_vm6, %v913_v11, %v916_v34  ;;  %vm928_vm9 = vcmp.lt.s32.totalorder %v907_v45, 3 }
 0x165   :  { %v650_v41 = vclz %v1661_v19  ;;  %v2489_v30 = vpop.eup %1891  ;;  %v935_v17 = vsel %vm929_vm8, %v922_v23, 920167782  ;;  %v938_v37 = vsel %vm926_vm6, %v916_v34, %v919_v27  ;;  %v800_v22 = vadd.s32 1, %v1668_v59 }
 0x166   :  { %v930_v56 = vsel %vm926_vm6, %v910_v13, %v913_v11  ;;  %v936_v55 = vsel %vm928_vm9, %v919_v27, %v935_v17  ;;  %v939_v60 = vsel %vm929_vm8, %v925_v29, 1326507024  ;;  %v932_v25 = vsel %vm928_vm9, %v916_v34, %v931_v47  ;;  %v182_v27 = vpop.permute.xlu0 %181 }
 0x167   :  { %v1662_v53 = vadd.s32 4294967294, %v650_v41  ;;  %v937_v24 = vsel %vm927_vm7, %v934_v16, %v936_v55  ;;  %v940_v2 = vsel %vm928_vm9, %v922_v23, %v939_v60  ;;  %vm801_vm12 = vcmp.gt.s32.totalorder %v800_v22, 0 }
 0x168   :  { %v941_v57 = vsel %vm927_vm7, %v938_v37, %v940_v2  ;;  %v2494_v19 = vmul.u32.u64.low %v2458_v39, %v937_v24  ;;  %v2495_v5 = vmul.u32.u64.high %v2458_v39, %v937_v24, %v2494_v19  ;;  %v802_v11 = vsel %vm801_vm12, %v800_v22, 0 }
 0x169   :  { %vm1663_vm13 = vcmp.lt.s32.totalorder %v1662_v53, 0  ;;  %v2499_v59 = vmul.u32.u64.low %v2458_v39, %v941_v57  ;;  %v2500_v41 = vmul.u32.u64.high %v2458_v39, %v941_v57, %v2499_v59  ;;  %vm688_vm14 = vcmp.lt.s32.totalorder %v2185_v63, 0 }
 0x16a   :  { %v653_v58 = vsel %vm1663_vm13, 0, %v1662_v53  ;;  %v638_v34 = vadd.s32 %v2412_v14, %v2422_v44  ;;  %v933_v29 = vsel %vm927_vm7, %v930_v56, %v932_v25  ;;  %v804_v47 = vand.u32 31, %v802_v11 }
 0x16b   :  { %v654_v23 = vsub.s32 32, %v653_v58  ;;  %v658_v13 = vsub.s32 4294967266, %v653_v58  ;;  %v2506_v16 = vshll.u32 %v798_v48, 8  ;;  %1893 = vpow2.f32 %v1006_v28 }
 0x16c   :  { %v2509_v17 = vadd.f32 %v2206_v26, %v182_v27  ;;  %v655_v37 = vshll.u32 %v2466_v0, %v653_v58  ;;  %v952_v55 = vadd.s32 1, %v2495_v5  ;;  %v770_v60 = vxor.u32 2147483648, %v2479_v3 }
 0x16d   :  { %v656_v22 = vshrl.u32 %v638_v34, %v654_v23  ;;  %v659_v53 = vadd.s32 127, %v658_v13  ;;  %v949_v14 = vmul.u32 %v2458_v39, %v933_v29  ;;  %vm951_vm15 = vc.u32 %v2500_v41, %v2494_v19 }
 0x16e   :  { %v805_v44 = vsub.s32 32, %v804_v47  ;;  %v953_v28 = vsel %vm951_vm15, %v952_v55, %v2495_v5  ;;  %v807_v26 = vshll.u32 %v1955_v31, %v804_v47  ;;  %v810_v25 = vshll.u32 %v1956_v33, %v804_v47 }
 0x16f   :  { %v657_v45 = vor.u32 %v656_v22, %v655_v37  ;;  %v660_v48 = vshll.u32 %v659_v53, 23  ;;  %v954_v56 = vadd.s32 %v953_v28, %v949_v14  ;;  %vm584_vm0 = vcmp.lt.s32.totalorder %v2191_v10, 0 }
 0x170   :  { %v808_v0 = vshrl.u32 %v1956_v33, %v805_v44  ;;  %v811_v24 = vshrl.u32 %v1957_v36, %v805_v44  ;;  %v803_v2 = vshrl.u32 %v802_v11, 5  ;;  %v813_v57 = vshll.u32 %v1957_v36, %v804_v47 }
 0x171   :  { %v661_v39 = vor.u32 4788187, %v660_v48  ;;  %v814_v58 = vshrl.u32 %v1958_v38, %v805_v44  ;;  %v664_v59 = vcvt.s32.f32 %v657_v45  ;;  %v955_v27 = vadd.s32 536870912, %v954_v56 }
 0x172   :  { %v809_v5 = vor.u32 %v808_v0, %v807_v26  ;;  %v812_v34 = vor.u32 %v811_v24, %v810_v25  ;;  %vm2527_vm1 = vcmp.le.f32.partialorder %v686_v6, 0.7853982  ;;  %v816_v29 = vshll.u32 %v1958_v38, %v804_v47 }
 0x173   :  { %v662_v33 = vand.u32 2147483647, %v661_v39  ;;  %v815_v13 = vor.u32 %v814_v58, %v813_v57  ;;  %v817_v11 = vshrl.u32 %v1959_v40, %v805_v44  ;;  %v771_v36 = vsel %vm688_vm14, %v770_v60, %v2479_v3 }
 0x174   :  { %vm2538_vm3 = vcmp.le.f32.partialorder %v582_v21, 0.7853982  ;;  %v2542_v6 = vshrl.u32 %v955_v27, 30  ;;  %v819_v22 = vshll.u32 %v1959_v40, %v804_v47  ;;  %v820_v53 = vshrl.u32 %v1960_v49, %v805_v44  ;;  %v197_v21 = vpop.permute.xlu1 %196 }
 0x175   :  { %v665_v55 = vmul.f32 %v664_v59, %v662_v33  ;;  %v806_v38 = vshrl.u32 %v1955_v31, %v805_v44  ;;  %v818_v14 = vor.u32 %v817_v11, %v816_v29  ;;  %vm822_vm5 = vcmp.lt.s32.totalorder %v803_v2, 1  ;;  %v2547_v45 = vpop.eup %1893  ;;  %v192_v33 = vpop.permute.xlu0 %191 }
 0x176   :  { %v957_v3 = vshll.u32 %v2542_v6, 30  ;;  %v821_v60 = vor.u32 %v820_v53, %v819_v22  ;;  %vm824_vm6 = vcmp.lt.s32.totalorder %v803_v2, 3  ;;  %vm825_vm7 = vcmp.lt.s32.totalorder %v803_v2, 4 }
 0x177   :  { %v666_v48 = vxor.u32 2147483648, %v665_v55  ;;  %v827_v28 = vsel %vm825_vm7, %v815_v13, 2102212464  ;;  %v830_v26 = vsel %vm822_vm5, %v809_v5, %v812_v34  ;;  %v831_v40 = vsel %vm825_vm7, %v818_v14, 920167782 }
 0x178   :  { %v2551_v47 = vsub.s32 %v954_v56, %v957_v3  ;;  %vm823_vm8 = vcmp.lt.s32.totalorder %v803_v2, 2  ;;  %v832_v31 = vsel %vm824_vm6, %v815_v13, %v831_v40  ;;  %v361_v49 = vadd.f32 %v2222_v42, %v197_v21 }
 0x179   :  { %v826_v44 = vsel %vm822_vm5, %v806_v38, %v809_v5  ;;  %v833_v0 = vsel %vm823_vm8, %v830_v26, %v832_v31  ;;  %v834_v25 = vsel %vm822_vm5, %v812_v34, %v815_v13  ;;  %v835_v24 = vsel %vm825_vm7, %v821_v60, 1326507024 }
 0x17a   :  { %v667_v39 = vsel %vm584_vm0, %v666_v48, %v665_v55  ;;  %v960_v57 = vsub.s32 0, %v2551_v47  ;;  %v828_v56 = vsel %vm824_vm6, %v812_v34, %v827_v28  ;;  %v836_v58 = vsel %vm824_vm6, %v818_v14, %v835_v24 }
 0x17b   :  { %v837_v59 = vsel %vm823_vm8, %v834_v25, %v836_v58  ;;  %v2565_v42 = vmul.u32.u64.low %v2506_v16, %v833_v0  ;;  %v2566_v27 = vmul.u32.u64.high %v2506_v16, %v833_v0, %v2565_v42  ;;  %v998_v5 = vmul.f32 -0.5, %v2509_v17 }
 0x17c   :  { %v774_v13 = vsel %vm2527_vm1, %v2185_v63, %v771_v36  ;;  %v1673_v29 = vmin.u32 %v960_v57, %v2551_v47  ;;  %v2575_v34 = vmul.u32.u64.low %v2506_v16, %v837_v59  ;;  %v2576_v11 = vmul.u32.u64.high %v2506_v16, %v837_v59, %v2575_v34 }
 0x17d   :  { %v670_v22 = vsel %vm2538_vm3, %v2191_v10, %v667_v39  ;;  %v829_v53 = vsel %vm823_vm8, %v826_v44, %v828_v56  ;;  %v1001_v55 = vmul.f32 -0.5, %v361_v49  ;;  %v356_v17 = vadd.f32 %v2227_v46, %v192_v33 }
 0x17e   :  { %v668_v38 = vsub.s32 4, %v2456_v15  ;;  %v962_v14 = vclz %v1673_v29  ;;  %v460_v36 = vsub.s32 4, %v2330_v20  ;;  %v772_v3 = vsub.s32 4, %v2371_v61 }
 0x17f   :  { %1895 = vcosq.f32 %v774_v13  ;;  %v848_v60 = vadd.s32 1, %v2566_v27  ;;  %v1004_v21 = vmul.f32 1.442695, %v998_v5  ;;  %v1961_v48 = vmov 0.0  }
 0x180   :  { %1762 = vmatprep.subr.bf16.mxu1 %v1961_v48  ;;  %1897 = vsinq.f32 %v670_v22  ;;  %v1674_v2 = vadd.s32 4294967294, %v962_v14  ;;  %v845_v28 = vmul.u32 %v2506_v16, %v829_v53  ;;  %vm847_vm9 = vc.u32 %v2576_v11, %v2565_v42 }
 0x181   :  { %v849_v46 = vsel %vm847_vm9, %v848_v60, %v2566_v27  ;;  %v1010_v26 = vmul.f32 1.442695, %v1001_v55  ;;  %v1000_v40 = vmul.f32 -0.5, %v356_v17  ;;  %v461_v31 = vsel %vm376_vm2, %v460_v36, %v2330_v20 }
 0x182   :  { %v669_v49 = vsel %vm584_vm0, %v668_v38, %v2456_v15  ;;  %1899 = vcosq.f32 %v670_v22  ;;  %vm1675_vm12 = vcmp.lt.s32.totalorder %v1674_v2, 0  ;;  %v850_v44 = vadd.s32 %v849_v46, %v845_v28 }
 0x183   :  { %1901 = vsinq.f32 %v774_v13  ;;  %v950_v16 = vadd.s32 %v2494_v19, %v2500_v41  ;;  %v965_v0 = vsel %vm1675_vm12, 0, %v1674_v2  ;;  %v463_v25 = vsel %vm2444_vm4, 0, %v461_v31 }
 0x184   :  { %v966_v24 = vsub.s32 32, %v965_v0  ;;  %v970_v39 = vsub.s32 4294967266, %v965_v0  ;;  %v851_v57 = vadd.s32 536870912, %v850_v44  ;;  %1903 = vpow2.f32 %v1004_v21 }
 0x185   :  { %vm466_vm2 = vweird.f32 %v2177_v54  ;;  %1905 = vpow2.f32 %v1010_v26  ;;  %v1008_v20 = vmul.f32 1.442695, %v1000_v40  ;;  %v467_v15 = vadd.s32 3, %v463_v25 }
 0x186   :  { %v564_v56 = vsub.s32 4, %v2296_v43  ;;  %v967_v58 = vshll.u32 %v2551_v47, %v965_v0  ;;  %v968_v59 = vshrl.u32 %v950_v16, %v966_v24  ;;  %v971_v27 = vadd.s32 127, %v970_v39 }
 0x187   :  { %v2605_v19 = vshrl.u32 %v851_v57, 30  ;;  %v468_v41 = vand.u32 3, %v467_v15  ;;  %v471_v18 = vxor.u32 2147483648, %v2489_v30  ;;  %v474_v5 = vxor.u32 2147483648, %v2487_v4 }
 0x188   :  { %v565_v33 = vsel %vm480_vm11, %v564_v56, %v2296_v43  ;;  %v969_v13 = vor.u32 %v968_v59, %v967_v58  ;;  %v972_v29 = vshll.u32 %v971_v27, 23  ;;  %v575_v22 = vxor.u32 2147483648, %v2484_v12 }
 0x189   :  { %v853_v34 = vshll.u32 %v2605_v19, 30  ;;  %v2614_v47 = vpop.eup %1895  ;;  %vm469_vm4 = vcmp.lt.s32.totalorder %v468_v41, 2  ;;  %v567_v53 = vsel %vm2359_vm10, 0, %v565_v33  ;;  %vm570_vm13 = vweird.f32 %v2175_v52 }
 0x18a   :  { %v578_v55 = vxor.u32 2147483648, %v2477_v51  ;;  %v671_v17 = vsel %vm2538_vm3, 0, %v669_v49  ;;  %v1898_v43 = vpop.eup %1897  ;;  %vm896_vm11 = vcmp.lt.s32.totalorder %v2365_v35, 0  ;;  %v973_v38 = vor.u32 4788187, %v972_v29 }
 0x18b   :  { %v2623_v14 = vsub.s32 %v850_v44, %v853_v34  ;;  %vm470_vm15 = vcmp.eq.s32.totalorder %v468_v41, 0  ;;  %vm473_vm0 = vcmp.eq.s32.totalorder %v468_v41, 2  ;;  %v976_v36 = vcvt.s32.f32 %v969_v13 }
 0x18c   :  { %v472_v60 = vsel %vm470_vm15, %v2487_v4, %v471_v18  ;;  %v475_v50 = vsel %vm473_vm0, %v474_v5, %v2489_v30  ;;  %v571_v21 = vadd.s32 3, %v567_v53  ;;  %v1900_v2 = vpop.eup %1899  ;;  %v974_v28 = vand.u32 2147483647, %v973_v38 }
 0x18d   :  { %v856_v46 = vsub.s32 0, %v2623_v14  ;;  %v476_v37 = vsel %vm469_vm4, %v472_v60, %v475_v50  ;;  %v675_v26 = vadd.s32 3, %v671_v17  ;;  %v1902_v40 = vpop.eup %1901  ;;  %v773_v31 = vsel %vm688_vm14, %v772_v3, %v2371_v61 }
 0x18e   :  { %1907 = vpow2.f32 %v1008_v20  ;;  %v477_v4 = vsel %vm466_vm2, nan, %v476_v37  ;;  %v572_v30 = vand.u32 3, %v571_v21  ;;  %v1904_v49 = vpop.eup %1903  ;;  %v977_v44 = vmul.f32 %v976_v36, %v974_v28 }
 0x18f   :  { %v1669_v16 = vmin.u32 %v856_v46, %v2623_v14  ;;  %v676_v0 = vand.u32 3, %v675_v26  ;;  %v679_v25 = vxor.u32 2147483648, %v1898_v43  ;;  %v1906_v24 = vpop.eup %1905  ;;  %v682_v39 = vxor.u32 2147483648, %v1900_v2  ;;  %v207_v46 = vpop.permute.xlu1 %206 }
 0x190   :  { %vm573_vm10 = vcmp.lt.s32.totalorder %v572_v30, 2  ;;  %vm574_vm3 = vcmp.eq.s32.totalorder %v572_v30, 0  ;;  %vm577_vm5 = vcmp.eq.s32.totalorder %v572_v30, 2  ;;  %v978_v57 = vxor.u32 2147483648, %v977_v44 }
 0x191   :  { %v858_v15 = vclz %v1669_v16  ;;  %v576_v61 = vsel %vm574_vm3, %v2477_v51, %v575_v22  ;;  %v579_v3 = vsel %vm577_vm5, %v578_v55, %v2484_v12  ;;  %v1016_v20 = vmul.f32 %v1904_v49, %v477_v4  ;;  %v202_v4 = vpop.permute.xlu0 %201 }
 0x192   :  { %v580_v54 = vsel %vm573_vm10, %v576_v61, %v579_v3  ;;  %vm678_vm14 = vcmp.eq.s32.totalorder %v676_v0, 0  ;;  %v775_v56 = vsel %vm2527_vm1, 0, %v773_v31  ;;  %vm681_vm6 = vcmp.eq.s32.totalorder %v676_v0, 2 }
 0x193   :  { %v1670_v58 = vadd.s32 4294967294, %v858_v15  ;;  %v581_v59 = vsel %vm570_vm13, nan, %v580_v54  ;;  %v680_v27 = vsel %vm678_vm14, %v1900_v2, %v679_v25  ;;  %v979_v41 = vsel %vm896_vm11, %v978_v57, %v977_v44 }
 0x194   :  { %v1017_v18 = vmul.f32 %v2547_v45, %v581_v59  ;;  %vm677_vm7 = vcmp.lt.s32.totalorder %v676_v0, 2  ;;  %v683_v51 = vsel %vm681_vm6, %v682_v39, %v1898_v43  ;;  %vm2648_vm8 = vcmp.le.f32.partialorder %v894_v32, 0.7853982 }
 0x195   :  { %vm1671_vm1 = vcmp.lt.s32.totalorder %v1670_v58, 0  ;;  %v684_v23 = vsel %vm677_vm7, %v680_v27, %v683_v51  ;;  %v779_v5 = vadd.s32 3, %v775_v56  ;;  %v846_v52 = vadd.s32 %v2565_v42, %v2576_v11 }
 0x196   :  { %v861_v33 = vsel %vm1671_vm1, 0, %v1670_v58  ;;  %v1032_v13 = vpack.c.bf16 %v1017_v18, %v1016_v20  ;;  %vm674_vm9 = vweird.f32 %v2191_v10  ;;  %v982_v45 = vsel %vm2648_vm8, %v2365_v35, %v979_v41 }
 0x197   :  { %v862_v29 = vsub.s32 32, %v861_v33  ;;  %v866_v34 = vsub.s32 4294967266, %v861_v33  ;;  %v780_v32 = vand.u32 3, %v779_v5  ;;  %v685_v53 = vsel %vm674_vm9, nan, %v684_v23 }
 0x198   :  { %v1908_v22 = vpop.eup %1907  ;;  %1763 = vmatpush3.bf16.msra.mxu1 %v1032_v13  ;;  %v783_v55 = vxor.u32 2147483648, %v1902_v40  ;;  %v786_v17 = vxor.u32 2147483648, %v2614_v47  ;;  %v863_v43 = vshll.u32 %v2623_v14, %v861_v33  ;;  %v980_v10 = vsub.s32 4, %v2542_v6 }
 0x199   :  { %v864_v42 = vshrl.u32 %v846_v52, %v862_v29  ;;  %v867_v11 = vadd.s32 127, %v866_v34  ;;  %1764 = vmatprep.subr.bf16.mxu1 %v1961_v48  ;;  %vm782_vm12 = vcmp.eq.s32.totalorder %v780_v32, 0  ;;  %1909 = vcosq.f32 %v982_v45 }
 0x19a   :  { %v784_v38 = vsel %vm782_vm12, %v2614_v47, %v783_v55  ;;  %vm785_vm2 = vcmp.eq.s32.totalorder %v780_v32, 2  ;;  %vm781_vm4 = vcmp.lt.s32.totalorder %v780_v32, 2  ;;  %1911 = vsinq.f32 %v982_v45  ;;  %v1871_v55 = vld [vmem:[%s2765_s4] sm:$0xff]  }
 0x19b   :  { %v865_v36 = vor.u32 %v864_v42, %v863_v43  ;;  %v868_v60 = vshll.u32 %v867_v11, 23  ;;  %v787_v50 = vsel %vm785_vm2, %v786_v17, %v1902_v40  ;;  %vm778_vm13 = vweird.f32 %v2185_v63  ;;  %v1185_v17 = vpop.permute.xlu0 %1184 }
 0x19c   :  { %v788_v21 = vsel %vm781_vm4, %v784_v38, %v787_v50  ;;  %v1018_v14 = vmul.f32 %v1908_v22, %v685_v53  ;;  %v981_v37 = vsel %vm896_vm11, %v980_v10, %v2542_v6  ;;  %vm1962_vm15 = vmmov 0   ;;  %v1190_v10 = vpop.permute.xlu1 %1189 }
 0x19d   :  { %v869_v2 = vor.u32 4788187, %v868_v60  ;;  %v789_v28 = vsel %vm778_vm13, nan, %v788_v21  ;;  %1768 = vmatprep.mubr.msk.bf16.mxu1 %vm1962_vm15, %v1961_v48  ;;  %v872_v31 = vcvt.s32.f32 %v865_v36  ;;  %v371_v40 = vadd.f32 %v2235_v62, %v207_v46 }
 0x19e   :  { %v1019_v26 = vmul.f32 %v1906_v24, %v789_v28  ;;  %v876_v49 = vsub.s32 4, %v2605_v19  ;;  %v366_v44 = vadd.f32 %v2240_v7, %v202_v4  ;;  %v983_v16 = vsel %vm2648_vm8, 0, %v981_v37 }
 0x19f   :  { %v870_v47 = vand.u32 2147483647, %v869_v2  ;;  %v1003_v0 = vmul.f32 -0.5, %v371_v40  ;;  %vm792_vm11 = vcmp.lt.s32.totalorder %v2433_v1, 0  ;;  %v987_v24 = vadd.s32 3, %v983_v16  ;;  %v1195_v2 = vpop.permute.xlu0 %1194  ;;  %v1874_v16 = vld [vmem:[%s2765_s4 + $0x10] sm:$0xff]  }
 0x1a0   :  { %v1033_v63 = vpack.c.bf16 %v1019_v26, %v1018_v14  ;;  %vm791_vm0 = vcmp.le.f32.partialorder %v790_v8, 0.7853982  ;;  %v877_v39 = vsel %vm792_vm11, %v876_v49, %v2605_v19  ;;  %v1002_v57 = vmul.f32 -0.5, %v366_v44  ;;  %v1200_v26 = vpop.permute.xlu1 %1199  ;;  %v1872_v49 = vld [vmem:[%s2765_s4 + $0x8] sm:$0xff]   ;;  %v1873_v44 = vld [vmem:[%s2764_s3 + $0x10] sm:$0xff]  }
 0x1a1   :  { %v873_v30 = vmul.f32 %v872_v31, %v870_v47  ;;  %v1014_v61 = vmul.f32 1.442695, %v1003_v0  ;;  %v879_v3 = vsel %vm791_vm0, 0, %v877_v39  ;;  %v988_v54 = vand.u32 3, %v987_v24 }
 0x1a2   :  { %1765 = vmatpush3.bf16.msra.mxu1 %v1033_v63  ;;  %v1012_v20 = vmul.f32 1.442695, %v1002_v57  ;;  %v883_v59 = vadd.s32 3, %v879_v3  ;;  %vm986_vm14 = vweird.f32 %v2365_v35  ;;  %vm882_vm1 = vweird.f32 %v2433_v1  ;;  %v1869_v35 = vld [vmem:[%s2764_s3] sm:$0xff]  }
 0x1a3   :  { %v874_v6 = vxor.u32 2147483648, %v873_v30  ;;  %1766 = vmatprep.subr.bf16.mxu1 %v1961_v48  ;;  %v1910_v25 = vpop.eup %1909  ;;  %vm990_vm10 = vcmp.eq.s32.totalorder %v988_v54, 0  ;;  %vm993_vm3 = vcmp.eq.s32.totalorder %v988_v54, 2  ;;  %vm989_vm5 = vcmp.lt.s32.totalorder %v988_v54, 2  ;;  %v1215_v0 = vpop.permute.xlu0 %1214 }
 0x1a4   :  { %v1912_v7 = vpop.eup %1911  ;;  %v994_v58 = vxor.u32 2147483648, %v1910_v25  ;;  %v884_v19 = vand.u32 3, %v883_v59  ;;  %vm1060_vm9 = vcmask 392192   ;;  %vm1242_vm12 = vcmask 261120  }
 0x1a5   :  { %v875_v62 = vsel %vm792_vm11, %v874_v6, %v873_v30  ;;  %v991_v56 = vxor.u32 2147483648, %v1912_v7  ;;  %1792 = vmatprep.mubr.msk.bf16.mxu0 %vm1242_vm12, %v1871_v55  ;;  %v1875_v6 = vld [vmem:[%s2764_s3 + $0x18] sm:$0xff]   ;;  %vm1556_vm2 = vcmask 130048   ;;  %vm1622_vm13 = vcmp.lt.s32.totalorder %v2022_v9, 3 }
 0x1a6   :  { %v878_v15 = vsel %vm791_vm0, %v2433_v1, %v875_v62  ;;  %v995_v27 = vsel %vm993_vm3, %v994_v58, %v1912_v7  ;;  %vm889_vm6 = vcmp.eq.s32.totalorder %v884_v19, 2  ;;  %vm886_vm7 = vcmp.eq.s32.totalorder %v884_v19, 0  ;;  %v1870_v1 = vld [vmem:[%s2764_s3 + $0x8] sm:$0xff]  }
 0x1a7   :  { %1913 = vcosq.f32 %v878_v15  ;;  %v992_v8 = vsel %vm990_vm10, %v1910_v25, %v991_v56  ;;  %vm885_vm8 = vcmp.lt.s32.totalorder %v884_v19, 2  ;;  %v1220_v25 = vpop.permute.xlu1 %1219  ;;  %v1225_v24 = vpop.permute.xlu0 %1224 }
 0x1a8   :  { %1915 = vsinq.f32 %v878_v15  ;;  %v996_v41 = vsel %vm989_vm5, %v992_v8, %v995_v27 }
 0x1a9   :  { %1917 = vpow2.f32 %v1014_v61  ;;  %v997_v5 = vsel %vm986_vm14, nan, %v996_v41  ;;  %v1876_v41 = vld [vmem:[%s2765_s4 + $0x18] sm:$0xff]  }
 0x1aa   :  { %1919 = vpow2.f32 %v1012_v20 }
 0x1ab   :  { %v1230_v7 = vpop.permute.xlu1 %1229 }
 0x1b1   :  { %v1914_v18 = vpop.eup %1913 }
 0x1b2   :  { %v1916_v51 = vpop.eup %1915  ;;  %v890_v12 = vxor.u32 2147483648, %v1914_v18 }
 0x1b3   :  { %v887_v23 = vxor.u32 2147483648, %v1916_v51  ;;  %v1918_v33 = vpop.eup %1917 }
 0x1b4   :  { %v891_v52 = vsel %vm889_vm6, %v890_v12, %v1916_v51  ;;  %v1021_v29 = vmul.f32 %v1918_v33, %v997_v5  ;;  %v1920_v34 = vpop.eup %1919 }
 0x1b5   :  { %v888_v13 = vsel %vm886_vm7, %v1914_v18, %v887_v23 }
 0x1b6   :  { %v892_v45 = vsel %vm885_vm8, %v888_v13, %v891_v52 }
 0x1b7   :  { %v893_v32 = vsel %vm882_vm1, nan, %v892_v45  ;;  %v1877_v45 = vld [vmem:[%s2765_s4 + $0x20] sm:$0xff]  }
 0x1b8   :  { %v1020_v22 = vmul.f32 %v1920_v34, %v893_v32  ;;  %v1377_v34 = vpop.permute.xlu1 %1376 }
 0x1ba   :  { %v1034_v53 = vpack.c.bf16 %v1021_v29, %v1020_v22  ;;  %v1372_v29 = vpop.permute.xlu0 %1371 }
 0x1bc   :  { %1767 = vmatpush3.bf16.msra.mxu1 %v1034_v53 }
 0x1bd   :  { %1820 = vmatprep.subr.bf16.mxu1 %v1961_v48 }
 0x1bf   :  { %1769 = vmatmul.mubr.msk.bf16.vlgmr.msra.gmra.mrb[0].mxu1 %vm1060_vm9, %v1869_v35  ;;  %v1382_v35 = vpop.permute.xlu0 %1381 }
 0x1c0   :  { %1772 = vmatprep.mubr.msk.bf16.mxu1 %vm1962_vm15, %v1961_v48 }
 0x1c7   :  { %1773 = vmatmul.mubr.msk.bf16.gmra.mrb[4].mxu1 %vm1060_vm9, %v1870_v1 }
 0x1c8   :  { %1776 = vmatprep.mubr.msk.bf16.mxu1 %vm1962_vm15, %v1961_v48 }
 0x1cf   :  { %1777 = vmatmul.mubr.msk.bf16.gmra.mrb[8].mxu1 %vm1060_vm9, %v1873_v44 }
 0x1d0   :  { %1780 = vmatprep.mubr.msk.bf16.mxu1 %vm1962_vm15, %v1961_v48 }
 0x1d7   :  { %1781 = vmatmul.mubr.msk.bf16.gmra.mrb[12].mxu1 %vm1060_vm9, %v1875_v6 }
 0x1d8   :  { %1784 = vmatprep.mubr.msk.bf16.mxu1 %vm1962_vm15, %v1961_v48 }
 0x292   :  { %v1110_v43 = vpop.f32.mrb[0].mxu1 }
 0x293   :  { %v1202_v42 = vadd.f32 %v1185_v17, %v1110_v43  ;;  %v1770_v11 = vpop.f32.mrb[1].mxu1 }
 0x294   :  { %v1113_v38 = vpop.f32.mrb[2].mxu1  ;;  %v1387_v11 = vpop.permute.xlu1 %1386 }
 0x295   :  { %v1203_v36 = vadd.f32 %v1190_v10, %v1113_v38  ;;  %v1771_v60 = vpop.f32.mrb[3].mxu1  ;;  %v1206_v50 = vmax.f32 %v1202_v42, 0.0 }
 0x297   :  { %v1207_v21 = vmax.f32 %v1203_v36, 0.0 }
 0x299   :  { %v1210_v14 = vpack.c.bf16 %v1207_v21, %v1206_v50 }
 0x29a   :  { %v1118_v28 = vpop.f32.mrb[4].mxu1 }
 0x29b   :  { %v1204_v46 = vadd.f32 %v1195_v2, %v1118_v28  ;;  %v1774_v37 = vpop.f32.mrb[5].mxu1  ;;  %1788 = vmatprep.subr.bf16.mxu0 %v1210_v14 }
 0x29c   :  { %v1121_v47 = vpop.f32.mrb[6].mxu1  ;;  %1789 = vmatpush3.bf16.msra.mxu0 %v1210_v14  ;;  %v1878_v37 = vld [vmem:[%s2765_s4 + $0x28] sm:$0xff]  }
 0x29d   :  { %v1205_v31 = vadd.f32 %v1200_v26, %v1121_v47  ;;  %v1775_v40 = vpop.f32.mrb[7].mxu1  ;;  %v1208_v4 = vmax.f32 %v1204_v46, 0.0  ;;  %v1879_v26 = vld [vmem:[%s2764_s3 + $0x20] sm:$0xff]   ;;  %v1402_v47 = vpop.permute.xlu0 %1401 }
 0x29e   :  { %1785 = vmatmul.mubr.msk.bf16.gmra.mrb[16].mxu1 %vm1060_vm9, %v1879_v26 }
 0x29f   :  { %v1209_v63 = vmax.f32 %v1205_v31, 0.0  ;;  %1822 = vmatprep.mubr.msk.bf16.mxu1 %vm1962_vm15, %v1961_v48  ;;  %v1407_v31 = vpop.permute.xlu1 %1406 }
 0x2a1   :  { %v1211_v30 = vpack.c.bf16 %v1209_v63, %v1208_v4  ;;  %v1412_v4 = vpop.permute.xlu0 %1411 }
 0x2a2   :  { %v1126_v18 = vpop.f32.mrb[8].mxu1 }
 0x2a3   :  { %1790 = vmatprep.subr.bf16.mxu0 %v1211_v30  ;;  %v1778_v51 = vpop.f32.mrb[9].mxu1 }
 0x2a4   :  { %1791 = vmatpush3.bf16.msra.mxu0 %v1211_v30  ;;  %v1129_v12 = vpop.f32.mrb[10].mxu1  ;;  %v1417_v30 = vpop.permute.xlu1 %1416 }
 0x2a5   :  { %v1779_v23 = vpop.f32.mrb[11].mxu1 }
 0x2a7   :  { %1793 = vmatmul.mubr.msk.bf16.vlgmr.msra.gmra.mrb[12].mxu0 %vm1242_vm12, %v1872_v49 }
 0x2a8   :  { %1800 = vmatprep.mubr.msk.bf16.mxu0 %vm1242_vm12, %v1874_v16 }
 0x2aa   :  { %v1134_v5 = vpop.f32.mrb[12].mxu1 }
 0x2ab   :  { %v1782_v52 = vpop.f32.mrb[13].mxu1 }
 0x2ac   :  { %v1137_v33 = vpop.f32.mrb[14].mxu1 }
 0x2ad   :  { %v1783_v13 = vpop.f32.mrb[15].mxu1 }
 0x37a   :  { %v1794_v62 = vpop.f32.mrb[12].mxu0 }
 0x37b   :  { %v1292_v39 = vadd.f32 %v1794_v62, %v1225_v24  ;;  %v1283_v57 = vpop.f32.mrb[13].mxu0 }
 0x37c   :  { %v1284_v15 = vadd.f32 %v1283_v57, %v1215_v0  ;;  %v1795_v61 = vpop.f32.mrb[14].mxu0  ;;  %v1142_v57 = vpop.f32.mrb[16].mxu1 }
 0x37d   :  { %v1295_v3 = vadd.f32 %v1795_v61, %v1230_v7  ;;  %v1286_v54 = vpop.f32.mrb[15].mxu0  ;;  %v1300_v56 = vmax.f32 %v1292_v39, 0.0  ;;  %v1880_v39 = vld [vmem:[%s2765_s4 + $0x30] sm:$0xff]   ;;  %v1786_v7 = vpop.f32.mrb[17].mxu1 }
 0x37e   :  { %v1287_v20 = vadd.f32 %v1286_v54, %v1220_v25  ;;  %v1298_v59 = vmax.f32 %v1284_v15, 0.0  ;;  %v1145_v15 = vpop.f32.mrb[18].mxu1 }
 0x37f   :  { %v1301_v58 = vmax.f32 %v1295_v3, 0.0  ;;  %v1787_v61 = vpop.f32.mrb[19].mxu1 }
 0x380   :  { %v1299_v8 = vmax.f32 %v1287_v20, 0.0 }
 0x381   :  { %v1303_v27 = vpack.c.bf16 %v1301_v58, %v1300_v56  ;;  %v1538_v56 = vpop.permute.xlu0 %1537 }
 0x382   :  { %v1302_v19 = vpack.c.bf16 %v1299_v8, %v1298_v59 }
 0x384   :  { %1796 = vmatprep.subr.bf16.mxu0 %v1302_v19 }
 0x385   :  { %1797 = vmatpush3.bf16.msra.mxu0 %v1302_v19  ;;  %v1554_v23 = vpop.permute.xlu0 %1553 }
 0x386   :  { %1798 = vmatprep.subr.bf16.mxu0 %v1303_v27 }
 0x389   :  { %1799 = vmatpush3.bf16.msra.mxu0 %v1303_v27 }
 0x38c   :  { %1801 = vmatmul.mubr.msk.bf16.vlgmr.msra.gmra.mrb[16].mxu0 %vm1242_vm12, %v1876_v41 }
 0x38d   :  { %1808 = vmatprep.mubr.msk.bf16.mxu0 %vm1242_vm12, %v1877_v45 }
 0x45f   :  { %v1802_v32 = vpop.f32.mrb[16].mxu0 }
 0x460   :  { %v1363_v22 = vadd.f32 %v1802_v32, %v1134_v5  ;;  %v1354_v53 = vpop.f32.mrb[17].mxu0 }
 0x461   :  { %v1355_v1 = vadd.f32 %v1354_v53, %v1126_v18  ;;  %v1803_v55 = vpop.f32.mrb[18].mxu0 }
 0x462   :  { %v1391_v17 = vadd.f32 %v1382_v35, %v1363_v22  ;;  %v1366_v43 = vadd.f32 %v1803_v55, %v1137_v33  ;;  %v1357_v42 = vpop.f32.mrb[19].mxu0 }
 0x463   :  { %v1389_v10 = vadd.f32 %v1372_v29, %v1355_v1  ;;  %v1358_v38 = vadd.f32 %v1357_v42, %v1129_v12  ;;  %v1549_v12 = vld [vmem:[%s2766_s5] sm:$0x3]  ;;  %s1963_s5 = smov [#allocation2]  }
 0x464   :  { %v1392_v36 = vadd.f32 %v1387_v11, %v1366_v43  ;;  %v1395_v50 = vmax.f32 %v1391_v17, 0.0  ;;  %s1631_s13 = sshll.u32 %s1963_s5, 4  ;;  %s1632_s13 = int_to_ptr.vmem [resolvable:$true] %s1631_s13 }
 0x465   :  { %v1390_v60 = vadd.f32 %v1377_v34, %v1358_v38  ;;  %v1393_v14 = vmax.f32 %v1389_v10, 0.0  ;;  %s1929_s14 = scalar_lea.vmem %s1632_s13, 64  ;;  %p1934_p1 = scmp.lt.s32.totalorder %s1632_s13, %s1632_s13 }
 0x466   :  { %v1396_v21 = vmax.f32 %v1392_v36, 0.0  ;;  %p1930_p0 = scmp.ne.s32.totalorder %s1632_s13, %s1929_s14  ;;  %p1935_p2 = scmp.lt.s32.totalorder %s1929_s14, %s1929_s14 }
 0x467   :  { %v1394_v2 = vmax.f32 %v1390_v60, 0.0 }
 0x468   :  { %v1398_v28 = vpack.c.bf16 %v1396_v21, %v1395_v50  ;;  %p1936_p3 = por %p1935_p2, %p1934_p1 }
 0x469   :  { %v1397_v46 = vpack.c.bf16 %v1394_v2, %v1393_v14 }
 0x46a   :  { %p1937_p4 = pnand %p1936_p3, %p1930_p0 }
 0x46b   :  { %1804 = vmatprep.subr.bf16.mxu0 %v1397_v46 }
 0x46c   :  { %1805 = vmatpush3.bf16.msra.mxu0 %v1397_v46 }
 0x46d   :  { %1806 = vmatprep.subr.bf16.mxu0 %v1398_v28 }
 0x470   :  { %1807 = vmatpush3.bf16.msra.mxu0 %v1398_v28 }
 0x471   :  { %1812 = vmatprep.subr.bf16.mxu0 %v1961_v48 }
 0x473   :  { %1809 = vmatmul.mubr.msk.bf16.vlgmr.msra.gmra.mrb[20].mxu0 %vm1242_vm12, %v1878_v37 }
 0x474   :  { %1816 = vmatprep.mubr.msk.bf16.mxu0 %vm1962_vm15, %v1961_v48 }
 0x546   :  { %v1810_v40 = vpop.f32.mrb[20].mxu0 }
 0x547   :  { %v1469_v63 = vpop.f32.mrb[21].mxu0  ;;  %v1478_v44 = vadd.f32 %v1810_v40, %v1412_v4 }
 0x548   :  { %v1811_v49 = vpop.f32.mrb[22].mxu0  ;;  %v1470_v0 = vadd.f32 %v1469_v63, %v1402_v47 }
 0x549   :  { %v1481_v16 = vadd.f32 %v1811_v49, %v1417_v30  ;;  %v1472_v6 = vpop.f32.mrb[23].mxu0 }
 0x54a   :  { %v1473_v25 = vadd.f32 %v1472_v6, %v1407_v31 }
 0x54b   :  { %v1485_v24 = vpack.c.bf16 %v1481_v16, %v1478_v44 }
 0x54c   :  { %v1484_v62 = vpack.c.bf16 %v1473_v25, %v1470_v0 }
 0x54e   :  { %1813 = vmatpush3.bf16.msra.mxu0 %v1484_v62 }
 0x54f   :  { %1814 = vmatprep.subr.bf16.mxu0 %v1961_v48  ;;  %v1543_v48 = vpop.permute.xlu1 %1542 }
 0x552   :  { %1815 = vmatpush3.bf16.msra.mxu0 %v1485_v24 }
 0x555   :  { %1817 = vmatmul.mubr.msk.bf16.vlgmr.msra.gmra.mrb[24].mxu0 %vm1242_vm12, %v1880_v39 }
 0x628   :  { %v1528_v3 = vpop.f32.mrb[24].mxu0 }
 0x629   :  { %v1529_v54 = vadd.f32 %v1528_v3, %v1142_v57  ;;  %v1818_v20 = vpop.f32.mrb[25].mxu0 }
 0x62a   :  { %v1531_v58 = vpop.f32.mrb[26].mxu0 }
 0x62b   :  { %v1545_v59 = vadd.f32 %v1538_v56, %v1529_v54  ;;  %v1532_v8 = vadd.f32 %v1531_v58, %v1145_v15  ;;  %v1819_v27 = vpop.f32.mrb[27].mxu0 }
 0x62d   :  { %v1546_v19 = vadd.f32 %v1543_v48, %v1532_v8  ;;  %v1547_v41 = vmax.f32 %v1545_v59, 0.0 }
 0x62f   :  { %v1548_v18 = vmax.f32 %v1546_v19, 0.0 }
 0x631   :  { %v1550_v51 = vpack.c.bf16 %v1548_v18, %v1547_v41 }
 0x633   :  { %1821 = vmatpush3.bf16.msra.mxu1 %v1550_v51 }
 0x636   :  { %1823 = vmatmul.mubr.msk.bf16.vlgmr.msra.gmra.mrb[20].mxu1 %vm1556_vm2, %v1549_v12 }
 0x709   :  { %v1594_v5 = vpop.f32.mrb[20].mxu1 }
 0x70a   :  { %v1595_v52 = vadd.f32 %v1594_v5, %v1554_v23  ;;  %v1824_v33 = vpop.f32.mrb[21].mxu1 }
 0x70b   :  { %v1597_v13 = vpop.f32.mrb[22].mxu1 }
 0x70c   :  { %v1600_v45 = vsub.f32 0.0, %v1595_v52  ;;  %v1607_v29 = vmin.f32 %v1595_v52, 8.0  ;;  %v1825_v34 = vpop.f32.mrb[23].mxu1  ;;  %vm1606_vm15 = vcmp.gt.f32.partialorder %v1595_v52, 8.0 }
 0x70e   :  { %v1601_v32 = vmul.f32 1.442695, %v1600_v45  ;;  %v1608_v22 = vmul.f32 1.442695, %v1607_v29 }
 0x710   :  { %1921 = vpow2.f32 %v1601_v32 }
 0x711   :  { %1923 = vpow2.f32 %v1608_v22 }
 0x71a   :  { %v1922_v53 = vpop.eup %1921 }
 0x71b   :  { %v1924_v35 = vpop.eup %1923  ;;  %v1603_v55 = vadd.f32 1.0, %v1922_v53 }
 0x71c   :  { %v1610_v1 = vadd.f32 1.0, %v1924_v35  ;;  %v1613_v17 = vmul.f32 -0.5, %v1924_v35  ;;  %v1616_v42 = vand.u32 2147483647, %v1924_v35 }
 0x71e   :  { %1925 = vlog2.f32 %v1610_v1  ;;  %v1614_v43 = vadd.f32 1.0, %v1613_v17  ;;  %vm1617_vm4 = vcmp.lt.f32.partialorder %v1616_v42, 0.0004427343 }
 0x71f   :  { %1927 = vrcp.f32 %v1603_v55 }
 0x720   :  { %v1615_v38 = vmul.f32 %v1924_v35, %v1614_v43 }
 0x728   :  { %v1926_v11 = vpop.eup %1925 }
 0x729   :  { %v1612_v10 = vmul.f32 0.6931472, %v1926_v11  ;;  %v1928_v60 = vpop.eup %1927 }
 0x72b   :  { %v1618_v36 = vsel %vm1617_vm4, %v1615_v38, %v1612_v10 }
 0x72c   :  { %v1619_v50 = vsel %vm1606_vm15, %v1595_v52, %v1618_v36 }
 0x72d   :  { %v1623_v21 = vsel %vm1622_vm13, %v1928_v60, %v1619_v50 }
 0x72e   :  { %1624 = vst [vmem:[#allocation2] sm:$0xf] %v1623_v21 }
 0x72f   :  { %1940 = shalt.err (!%p1937_p4)
}
 0x730   :  { %s1941_s6 = scalar_lea.hbm %s2768_s7, 64 }
 0x731   :  { %p1942_p5 = scmp.ne.s32.totalorder %s2768_s7, %s1941_s6  ;;  %p1945_p6 = scmp.lt.u32.totalorder %s1941_s6, %s2768_s7 }
 0x733   :  { %p1947_p7 = pnand %p1945_p6, %p1942_p5 }
 0x735   :  { %1950 = shalt.err (!%p1947_p7)
}
 0x736   :  { %1634 = dma.vmem_to_hbm [thread:$0]  %s1632_s13, 64, %s2768_s7, [#allocation3]  }
 0x737   :  { %1951 = dma.done.wait [#allocation3], 64  }
 0x738   :  { %1952 = vsyncadd [#allocation3], 4294967232 }
 0x739   :  { %1638 = vsyncpa [#allocation3], 1 }

</bundles_post_ra>
